<compile_context>
chip_gen: v7x
topology: tpu7x:2x2x1
jax: 0.10.0
libtpu: 0.0.40
codegen_flags: <defaults>
</compile_context>

<pallas_src>
import functools

import jax
import jax.numpy as jnp
from jax.experimental import pallas as pl
from jax.experimental.pallas import tpu as pltpu

K_STEPS = 4  # fc0 contraction chunks (pipeline depth over the w0 DMA)


def _round_up(n, m):
    return ((n + m - 1) // m) * m


# ---------------------------------------------------------------------------
# Fused kernel (grid axis = fc0 frequency chunks, "arbitrary")
# ---------------------------------------------------------------------------
def _wave_fft_net_kernel(patches_ref, wconv_ref, dft_ref, w0_ref, b0_ref,
                         w1_ref, b1_ref, out_ref, mag_ref, acc_ref,
                         *, batch, l_pad, n_freq, f_pad, k_steps):
    k = pl.program_id(0)
    kchunk = n_freq // k_steps

    @pl.when(k == 0)
    def _prologue():
        # Conv as ONE MXU matmul, batch on the sublane axis (linear in B).
        # Conv bias is folded: trailing ones column in patches x bias row in
        # wconv.  Padded feature lanes (f >= 100) stay exactly zero.
        conv = jnp.dot(patches_ref[...], wconv_ref[...],
                       preferred_element_type=jnp.float32)      # (B*L_pad, F_pad)
        # Per-sample dense |DFT| against the fused [cos; -sin] matrix
        # (rows 0..NF-1 = Re, NF..2NF-1 = Im of exp(-i*2*pi*t*k/NF)).
        # The DFT valid-mask zeroes the padded time rows (incl. their bias).
        for b in range(batch):
            conv_b = conv[b * l_pad:(b + 1) * l_pad, :]          # (L_pad, F_pad)
            reim = jnp.dot(dft_ref[...], conv_b,
                           preferred_element_type=jnp.float32)   # (2NF, F_pad)
            re = reim[:n_freq, :]
            im = reim[n_freq:, :]
            # Cast to bf16 right after the magnitude (halves scratch bytes;
            # the fc0 MXU path is bf16 x bf16 -> f32 anyway).
            mag = jnp.sqrt(re * re + im * im).astype(jnp.bfloat16)   # (NF, F_pad)
            for s in range(k_steps):
                mag_ref[s, b, :, :] = mag[s * kchunk:(s + 1) * kchunk, :]
        # fc0 bias folded into the accumulator init.
        acc_ref[...] = jnp.broadcast_to(b0_ref[...], acc_ref.shape)

    # fc0 partial for this frequency chunk.  The (B, kchunk, F_pad) -> 
    # (B, kchunk*F_pad) relayout happens once per step and hides under the
    # next w0 chunk's DMA.  Row order (k-major, f-minor) matches the
    # pre-permuted w0 rows, so no runtime transpose is needed.
    feat_chunk = mag_ref[k].reshape(batch, kchunk * f_pad)
    acc_ref[...] += jnp.dot(feat_chunk, w0_ref[...],
                            preferred_element_type=jnp.float32)

    @pl.when(k == pl.num_programs(0) - 1)
    def _epilogue():
        h = acc_ref[...]
        # ELU(alpha=1); dead-branch exp argument clamped so it cannot overflow.
        # Padded lanes are exactly 0 -> ELU(0) = 0 -> killed by w1's zero rows.
        h = jnp.where(h > 0, h, jnp.exp(jnp.minimum(h, 0.0)) - 1.0)
        logits = jnp.dot(h, w1_ref[...],
                         preferred_element_type=jnp.float32) + b1_ref[...]
        # softmax (EUP reciprocal + one Newton step keeps f32-level accuracy).
        m1 = jnp.max(logits, axis=-1, keepdims=True)
        e1 = jnp.exp(logits - m1)
        s1 = jnp.sum(e1, axis=-1, keepdims=True)
        r = pl.reciprocal(s1, approx=True)
        r = r * (2.0 - s1 * r)
        sm = e1 * r
        # log_softmax of the softmax output (the torch module's double
        # normalization).  sm is in [0,1], so no max-subtraction is needed.
        lse = jnp.log(jnp.sum(jnp.exp(sm), axis=-1, keepdims=True))
        out_ref[...] = sm - lse


# ---------------------------------------------------------------------------
# One-time parameter packing (runs once, outside the per-call forward).
# Batch-independent (no O(B^2) kron).
# ---------------------------------------------------------------------------
def prepare_params(params, time_step, n_freq=64):
    Wc, bc, W0, b0, W1, b1 = params
    F_ = Wc.shape[0]                         # n_feature (100)
    C, K = Wc.shape[2], Wc.shape[3]
    CK = C * K
    NF = n_freq
    F_pad = _round_up(F_, 128)
    F_out_pad = _round_up(F_, 128)
    L = time_step - K + 1                    # valid-conv output length
    L_pad = _round_up(L, 8)

    # Conv weight: transposed + lane-padded, conv bias folded in as the last
    # row (matched by a trailing ones column in the im2col patches).
    WcT = Wc.reshape(F_, CK).T.astype(jnp.float32)               # (CK, F_)
    WcT = jnp.pad(WcT, ((0, 0), (0, F_pad - F_)))                # (CK, F_pad)
    bc_row = jnp.pad(bc.astype(jnp.float32), (0, F_pad - F_))[None, :]
    wconv = jnp.concatenate([WcT, bc_row], axis=0)               # (CK+1, F_pad)

    # Fused DFT matrix [cos; -sin] (exp(-i*2*pi*t*k/NF)), time on the
    # contraction axis.  Columns t >= min(L, NF) are zeroed: torch.fft.fft
    # (n=NF) zero-pads / truncates, and the mask also kills the bias added on
    # the L -> L_pad padding rows.
    t = jnp.arange(L_pad, dtype=jnp.float32)[None, :]
    kk = jnp.arange(NF, dtype=jnp.float32)[:, None]
    ang = 2.0 * jnp.pi * t * kk / float(NF)
    valid = ((t < L) & (t < NF)).astype(jnp.float32)
    dftt = jnp.concatenate([jnp.cos(ang) * valid, -jnp.sin(ang) * valid],
                           axis=0)                               # (2*NF, L_pad)

    # fc0: rows permuted from torch's (f-major, k-minor) flatten to the
    # kernel's (k-major, f-minor) flatten, zero-padded, stored as bf16
    # (largest HBM transfer of the whole net -> ~2x less DMA).
    W0_kfj = jnp.transpose(W0.reshape(F_, F_, NF), (2, 1, 0))    # (NF, F_, F_)
    W0_kfj = jnp.pad(W0_kfj, ((0, 0), (0, F_pad - F_), (0, F_out_pad - F_)))
    w0r = W0_kfj.reshape(NF * F_pad, F_out_pad).astype(jnp.bfloat16)
    b0r = jnp.pad(b0.astype(jnp.float32), (0, F_out_pad - F_))[None, :]

    # clf: transposed + zero-padded rows (tiny, kept f32).
    w1r = jnp.pad(W1.T.astype(jnp.float32), ((0, F_out_pad - F_), (0, 0)))
    b1r = b1.astype(jnp.float32)[None, :]

    return (wconv, dftt, w0r, b0r, w1r, b1r)


# ---------------------------------------------------------------------------
# Forward wrapper (single fused pallas_call, K-tiled fc0 contraction)
# ---------------------------------------------------------------------------
@jax.jit
def wave_fft_net_forward(x, prep):
    wconv, dftt, w0r, b0r, w1r, b1r = prep
    B, C, T = x.shape
    CKb = wconv.shape[0]
    CK = CKb - 1
    K = CK // C
    F_pad = wconv.shape[1]
    NF = dftt.shape[0] // 2
    L_pad = dftt.shape[1]
    F_out_pad = w1r.shape[0]
    NC = w1r.shape[1]
    L = T - K + 1
    k_steps = K_STEPS
    assert NF % k_steps == 0
    kchunk = NF // k_steps

    # im2col with time on sublanes and (chan, tap) on lanes, batch stacked on
    # sublanes:  patches[b*L_pad + t, c*K + kk] = x[b, c, t + kk].
    # Trailing ones column carries the folded conv bias.
    idx = jnp.arange(L)[:, None] + jnp.arange(K)[None, :]            # (L, K)
    win = x.astype(jnp.float32)[:, :, idx]                           # (B, C, L, K)
    patches = jnp.transpose(win, (0, 2, 1, 3)).reshape(B, L, CK)
    patches = jnp.pad(patches, ((0, 0), (0, L_pad - L), (0, 0)))
    ones = jnp.ones((B, L_pad, 1), jnp.float32)
    patches = jnp.concatenate([patches, ones], axis=-1).reshape(B * L_pad, CKb)

    flops = (2 * B * L_pad * CKb * F_pad            # conv
             + 2 * B * 2 * NF * L_pad * F_pad       # DFT
             + 2 * B * NF * F_pad * F_out_pad       # fc0
             + 2 * B * F_out_pad * NC)              # clf
    bytes_accessed = (patches.size * 4 + wconv.size * 4 + dftt.size * 4
                      + w0r.size * 2 + b0r.size * 4 + w1r.size * 4
                      + b1r.size * 4 + B * NC * 4)
    transcendentals = B * F_out_pad + 4 * B * NC

    kernel = functools.partial(_wave_fft_net_kernel, batch=B, l_pad=L_pad,
                               n_freq=NF, f_pad=F_pad, k_steps=k_steps)
    return pl.pallas_call(
        kernel,
        out_shape=jax.ShapeDtypeStruct((B, NC), jnp.float32),
        grid=(k_steps,),
        in_specs=[
            pl.BlockSpec((B * L_pad, CKb), lambda k: (0, 0)),
            pl.BlockSpec((CKb, F_pad), lambda k: (0, 0)),
            pl.BlockSpec((2 * NF, L_pad), lambda k: (0, 0)),
            pl.BlockSpec((kchunk * F_pad, F_out_pad), lambda k: (k, 0)),  # K-tiled
            pl.BlockSpec((1, F_out_pad), lambda k: (0, 0)),
            pl.BlockSpec((F_out_pad, NC), lambda k: (0, 0)),
            pl.BlockSpec((1, NC), lambda k: (0, 0)),
        ],
        out_specs=pl.BlockSpec((B, NC), lambda k: (0, 0)),
        scratch_shapes=[
            pltpu.VMEM((k_steps, B, kchunk, F_pad), jnp.bfloat16),  # |DFT| mags
            pltpu.VMEM((B, F_out_pad), jnp.float32),                # fc0 accumulator
        ],
        compiler_params=pltpu.CompilerParams(
            dimension_semantics=("arbitrary",),
        ),
        cost_estimate=pl.CostEstimate(
            flops=flops,
            transcendentals=transcendentals,
            bytes_accessed=bytes_accessed),
    )(patches, wconv, dftt, w0r, b0r, w1r, b1r)


# ---------------------------------------------------------------------------
# Pure-JAX reference (jnp.fft).  fc0 mirrors the kernel's documented bf16
# weight/activation storage (f32 accumulation); everything else is f32.
# ---------------------------------------------------------------------------
def reference_forward(x, params, n_freq=64):
    Wc, bc, W0, b0, W1, b1 = params
    B, C, T = x.shape
    F_, _, _, K = Wc.shape
    L = T - K + 1
    patches = jnp.stack([x[:, :, t:t + K] for t in range(L)],
                        axis=1).reshape(B, L, C * K)
    conv = patches @ Wc.reshape(F_, C * K).T + bc               # (B, L, F)
    conv = jnp.transpose(conv, (0, 2, 1))                       # (B, F, L)
    mag = jnp.abs(jnp.fft.fft(conv, n=n_freq, axis=-1))         # (B, F, NF)
    flat = mag.reshape(B, -1)
    flat_q = flat.astype(jnp.bfloat16).astype(jnp.float32)
    W0_q = W0.astype(jnp.bfloat16).astype(jnp.float32)
    h = flat_q @ W0_q.T + b0
    h = jnp.where(h > 0, h, jnp.exp(jnp.minimum(h, 0.0)) - 1.0)
    logits = h @ W1.T + b1
    sm = jax.nn.softmax(logits, axis=-1)
    return jax.nn.log_softmax(sm, axis=-1)


# ---------------------------------------------------------------------------
# Deterministic parameter init (shapes follow the torch module's __init__)
# ---------------------------------------------------------------------------
def init_params(key, in_chan, n_classes, n_feature=100, n_freq=64, ksize=8):
    ks = jax.random.split(key, 6)
    fan_conv = in_chan * ksize
    fan0 = n_feature * n_freq
    u = lambda k, shape, fan: jax.random.uniform(k, shape, jnp.float32, -1.0, 1.0) / jnp.sqrt(fan)
    Wc = u(ks[0], (n_feature, 1, in_chan, ksize), fan_conv)    # Conv2d(1, 100, (in_chan, 8))
    bc = u(ks[1], (n_feature,), fan_conv)
    W0 = u(ks[2], (n_feature, fan0), fan0)                     # Linear(100*64 -> 100)
    b0 = u(ks[3], (n_feature,), fan0)
    W1 = u(ks[4], (n_classes, n_feature), n_feature)           # Linear(100 -> n_classes)
    b1 = u(ks[5], (n_classes,), n_feature)
    return (Wc, bc, W0, b0, W1, b1)


if __name__ == "__main__":
    B, in_chan, time_step, n_classes, n_freq = 2, 4, 32, 5, 64

    key = jax.random.PRNGKey(0)
    kx, kp = jax.random.split(key)
    x = jax.random.normal(kx, (B, in_chan, time_step), dtype=jnp.float32)
    params = init_params(kp, in_chan, n_classes, n_freq=n_freq)

    prep = prepare_params(params, time_step, n_freq=n_freq)   # once, outside forward
    out = jax.block_until_ready(wave_fft_net_forward(x, prep))

    ref = jax.block_until_ready(reference_forward(x, params, n_freq=n_freq))
    assert out.shape == (B, n_classes)
    assert jnp.allclose(out, ref, rtol=2e-3, atol=2e-3), (out, ref)

    print("KERNEL_OK")
</pallas_src>

<mosaic_0001>
module attributes {stable_mosaic.version = 11 : i64} {
  func.func @_wave_fft_net_kernel(%arg0: i32, %arg1: memref<64x33xf32, #tpu.memory_space<vmem>>, %arg2: memref<33x128xf32, #tpu.memory_space<vmem>>, %arg3: memref<128x32xf32, #tpu.memory_space<vmem>>, %arg4: memref<2048x128xbf16, #tpu.memory_space<vmem>>, %arg5: memref<1x128xf32, #tpu.memory_space<vmem>>, %arg6: memref<128x5xf32, #tpu.memory_space<vmem>>, %arg7: memref<1x5xf32, #tpu.memory_space<vmem>>, %arg8: memref<2x5xf32, #tpu.memory_space<vmem>>, %arg9: memref<4x2x16x128xbf16, #tpu.memory_space<vmem>>, %arg10: memref<2x128xf32, #tpu.memory_space<vmem>>) attributes {dimension_semantics = [#tpu.dimension_semantics<arbitrary>], iteration_bounds = array<i64: 4>, scalar_prefetch = 0 : i64, scratch_operands = 2 : i64, tpu.core_type = #tpu.core_type<tc>, window_params = [{pipeline_mode = #tpu.pipeline_mode<synchronous>, transform_indices = @transform_0, window_bounds = array<i64: 64, 33>}, {pipeline_mode = #tpu.pipeline_mode<synchronous>, transform_indices = @transform_1, window_bounds = array<i64: 33, 128>}, {pipeline_mode = #tpu.pipeline_mode<synchronous>, transform_indices = @transform_2, window_bounds = array<i64: 128, 32>}, {transform_indices = @transform_3, window_bounds = array<i64: 2048, 128>}, {pipeline_mode = #tpu.pipeline_mode<synchronous>, transform_indices = @transform_4, window_bounds = array<i64: 1, 128>}, {pipeline_mode = #tpu.pipeline_mode<synchronous>, transform_indices = @transform_5, window_bounds = array<i64: 128, 5>}, {pipeline_mode = #tpu.pipeline_mode<synchronous>, transform_indices = @transform_6, window_bounds = array<i64: 1, 5>}, {pipeline_mode = #tpu.pipeline_mode<synchronous>, transform_indices = @transform_7, window_bounds = array<i64: 2, 5>}]} {
    %c0_i32 = arith.constant 0 : i32
    %0 = arith.cmpi eq, %arg0, %c0_i32 : i32
    %1 = arith.extui %0 : i1 to i32
    %c0_i32_0 = arith.constant 0 : i32
    %2 = arith.cmpi ne, %1, %c0_i32_0 : i32
    scf.if %2 {
      %c0_10 = arith.constant 0 : index
      %c0_11 = arith.constant 0 : index
      %15 = vector.load %arg1[%c0_10, %c0_11] : memref<64x33xf32, #tpu.memory_space<vmem>>, vector<64x33xf32>
      %c0_12 = arith.constant 0 : index
      %c0_13 = arith.constant 0 : index
      %16 = vector.load %arg2[%c0_12, %c0_13] : memref<33x128xf32, #tpu.memory_space<vmem>>, vector<33x128xf32>
      %cst_14 = arith.constant dense<0.000000e+00> : vector<64x128xf32>
      %17 = tpu.matmul %15, %16, %cst_14 {dimension_numbers = #tpu.dot_dimension_numbers<[1], [0], [0], [1], [0, 0, 1, 1], [], []>} : vector<64x33xf32>, vector<33x128xf32>, vector<64x128xf32> -> vector<64x128xf32>
      %18 = vector.extract_strided_slice %17 {offsets = [0, 0], sizes = [32, 128], strides = [1, 1]} : vector<64x128xf32> to vector<32x128xf32>
      %c0_15 = arith.constant 0 : index
      %c0_16 = arith.constant 0 : index
      %19 = vector.load %arg3[%c0_15, %c0_16] : memref<128x32xf32, #tpu.memory_space<vmem>>, vector<128x32xf32>
      %cst_17 = arith.constant dense<0.000000e+00> : vector<128x128xf32>
      %20 = tpu.matmul %19, %18, %cst_17 {dimension_numbers = #tpu.dot_dimension_numbers<[1], [0], [0], [1], [0, 0, 1, 1], [], []>} : vector<128x32xf32>, vector<32x128xf32>, vector<128x128xf32> -> vector<128x128xf32>
      %21 = vector.extract_strided_slice %20 {offsets = [0, 0], sizes = [64, 128], strides = [1, 1]} : vector<128x128xf32> to vector<64x128xf32>
      %22 = vector.extract_strided_slice %20 {offsets = [64, 0], sizes = [64, 128], strides = [1, 1]} : vector<128x128xf32> to vector<64x128xf32>
      %23 = arith.mulf %21, %21 : vector<64x128xf32>
      %24 = arith.mulf %22, %22 : vector<64x128xf32>
      %25 = arith.addf %23, %24 : vector<64x128xf32>
      %26 = math.sqrt %25 : vector<64x128xf32>
      %27 = arith.truncf %26 : vector<64x128xf32> to vector<64x128xbf16>
      %28 = vector.extract_strided_slice %27 {offsets = [0, 0], sizes = [16, 128], strides = [1, 1]} : vector<64x128xbf16> to vector<16x128xbf16>
      %c0_18 = arith.constant 0 : index
      %c0_19 = arith.constant 0 : index
      %c0_20 = arith.constant 0 : index
      %c0_21 = arith.constant 0 : index
      %29 = vector.load %arg9[%c0_18, %c0_19, %c0_20, %c0_21] : memref<4x2x16x128xbf16, #tpu.memory_space<vmem>>, vector<1x1x16x128xbf16>
      %30 = vector.shape_cast %29 : vector<1x1x16x128xbf16> to vector<16x128xbf16>
      %31 = vector.shape_cast %28 : vector<16x128xbf16> to vector<1x1x16x128xbf16>
      tpu.vector_store %arg9[%c0_18, %c0_19, %c0_20, %c0_21], %31 {strides = array<i32>} : memref<4x2x16x128xbf16, #tpu.memory_space<vmem>>, vector<1x1x16x128xbf16>,
      %32 = vector.extract_strided_slice %27 {offsets = [16, 0], sizes = [16, 128], strides = [1, 1]} : vector<64x128xbf16> to vector<16x128xbf16>
      %c1 = arith.constant 1 : index
      %c0_22 = arith.constant 0 : index
      %c0_23 = arith.constant 0 : index
      %c0_24 = arith.constant 0 : index
      %33 = vector.load %arg9[%c1, %c0_22, %c0_23, %c0_24] : memref<4x2x16x128xbf16, #tpu.memory_space<vmem>>, vector<1x1x16x128xbf16>
      %34 = vector.shape_cast %33 : vector<1x1x16x128xbf16> to vector<16x128xbf16>
      %35 = vector.shape_cast %32 : vector<16x128xbf16> to vector<1x1x16x128xbf16>
      tpu.vector_store %arg9[%c1, %c0_22, %c0_23, %c0_24], %35 {strides = array<i32>} : memref<4x2x16x128xbf16, #tpu.memory_space<vmem>>, vector<1x1x16x128xbf16>,
      %36 = vector.extract_strided_slice %27 {offsets = [32, 0], sizes = [16, 128], strides = [1, 1]} : vector<64x128xbf16> to vector<16x128xbf16>
      %c2 = arith.constant 2 : index
      %c0_25 = arith.constant 0 : index
      %c0_26 = arith.constant 0 : index
      %c0_27 = arith.constant 0 : index
      %37 = vector.load %arg9[%c2, %c0_25, %c0_26, %c0_27] : memref<4x2x16x128xbf16, #tpu.memory_space<vmem>>, vector<1x1x16x128xbf16>
      %38 = vector.shape_cast %37 : vector<1x1x16x128xbf16> to vector<16x128xbf16>
      %39 = vector.shape_cast %36 : vector<16x128xbf16> to vector<1x1x16x128xbf16>
      tpu.vector_store %arg9[%c2, %c0_25, %c0_26, %c0_27], %39 {strides = array<i32>} : memref<4x2x16x128xbf16, #tpu.memory_space<vmem>>, vector<1x1x16x128xbf16>,
      %40 = vector.extract_strided_slice %27 {offsets = [48, 0], sizes = [16, 128], strides = [1, 1]} : vector<64x128xbf16> to vector<16x128xbf16>
      %c3 = arith.constant 3 : index
      %c0_28 = arith.constant 0 : index
      %c0_29 = arith.constant 0 : index
      %c0_30 = arith.constant 0 : index
      %41 = vector.load %arg9[%c3, %c0_28, %c0_29, %c0_30] : memref<4x2x16x128xbf16, #tpu.memory_space<vmem>>, vector<1x1x16x128xbf16>
      %42 = vector.shape_cast %41 : vector<1x1x16x128xbf16> to vector<16x128xbf16>
      %43 = vector.shape_cast %40 : vector<16x128xbf16> to vector<1x1x16x128xbf16>
      tpu.vector_store %arg9[%c3, %c0_28, %c0_29, %c0_30], %43 {strides = array<i32>} : memref<4x2x16x128xbf16, #tpu.memory_space<vmem>>, vector<1x1x16x128xbf16>,
      %44 = vector.extract_strided_slice %17 {offsets = [32, 0], sizes = [32, 128], strides = [1, 1]} : vector<64x128xf32> to vector<32x128xf32>
      %c0_31 = arith.constant 0 : index
      %c0_32 = arith.constant 0 : index
      %45 = vector.load %arg3[%c0_31, %c0_32] : memref<128x32xf32, #tpu.memory_space<vmem>>, vector<128x32xf32>
      %cst_33 = arith.constant dense<0.000000e+00> : vector<128x128xf32>
      %46 = tpu.matmul %45, %44, %cst_33 {dimension_numbers = #tpu.dot_dimension_numbers<[1], [0], [0], [1], [0, 0, 1, 1], [], []>} : vector<128x32xf32>, vector<32x128xf32>, vector<128x128xf32> -> vector<128x128xf32>
      %47 = vector.extract_strided_slice %46 {offsets = [0, 0], sizes = [64, 128], strides = [1, 1]} : vector<128x128xf32> to vector<64x128xf32>
      %48 = vector.extract_strided_slice %46 {offsets = [64, 0], sizes = [64, 128], strides = [1, 1]} : vector<128x128xf32> to vector<64x128xf32>
      %49 = arith.mulf %47, %47 : vector<64x128xf32>
      %50 = arith.mulf %48, %48 : vector<64x128xf32>
      %51 = arith.addf %49, %50 : vector<64x128xf32>
      %52 = math.sqrt %51 : vector<64x128xf32>
      %53 = arith.truncf %52 : vector<64x128xf32> to vector<64x128xbf16>
      %54 = vector.extract_strided_slice %53 {offsets = [0, 0], sizes = [16, 128], strides = [1, 1]} : vector<64x128xbf16> to vector<16x128xbf16>
      %c0_34 = arith.constant 0 : index
      %c1_35 = arith.constant 1 : index
      %c0_36 = arith.constant 0 : index
      %c0_37 = arith.constant 0 : index
      %55 = vector.load %arg9[%c0_34, %c1_35, %c0_36, %c0_37] : memref<4x2x16x128xbf16, #tpu.memory_space<vmem>>, vector<1x1x16x128xbf16>
      %56 = vector.shape_cast %55 : vector<1x1x16x128xbf16> to vector<16x128xbf16>
      %57 = vector.shape_cast %54 : vector<16x128xbf16> to vector<1x1x16x128xbf16>
      tpu.vector_store %arg9[%c0_34, %c1_35, %c0_36, %c0_37], %57 {strides = array<i32>} : memref<4x2x16x128xbf16, #tpu.memory_space<vmem>>, vector<1x1x16x128xbf16>,
      %58 = vector.extract_strided_slice %53 {offsets = [16, 0], sizes = [16, 128], strides = [1, 1]} : vector<64x128xbf16> to vector<16x128xbf16>
      %c1_38 = arith.constant 1 : index
      %c1_39 = arith.constant 1 : index
      %c0_40 = arith.constant 0 : index
      %c0_41 = arith.constant 0 : index
      %59 = vector.load %arg9[%c1_38, %c1_39, %c0_40, %c0_41] : memref<4x2x16x128xbf16, #tpu.memory_space<vmem>>, vector<1x1x16x128xbf16>
      %60 = vector.shape_cast %59 : vector<1x1x16x128xbf16> to vector<16x128xbf16>
      %61 = vector.shape_cast %58 : vector<16x128xbf16> to vector<1x1x16x128xbf16>
      tpu.vector_store %arg9[%c1_38, %c1_39, %c0_40, %c0_41], %61 {strides = array<i32>} : memref<4x2x16x128xbf16, #tpu.memory_space<vmem>>, vector<1x1x16x128xbf16>,
      %62 = vector.extract_strided_slice %53 {offsets = [32, 0], sizes = [16, 128], strides = [1, 1]} : vector<64x128xbf16> to vector<16x128xbf16>
      %c2_42 = arith.constant 2 : index
      %c1_43 = arith.constant 1 : index
      %c0_44 = arith.constant 0 : index
      %c0_45 = arith.constant 0 : index
      %63 = vector.load %arg9[%c2_42, %c1_43, %c0_44, %c0_45] : memref<4x2x16x128xbf16, #tpu.memory_space<vmem>>, vector<1x1x16x128xbf16>
      %64 = vector.shape_cast %63 : vector<1x1x16x128xbf16> to vector<16x128xbf16>
      %65 = vector.shape_cast %62 : vector<16x128xbf16> to vector<1x1x16x128xbf16>
      tpu.vector_store %arg9[%c2_42, %c1_43, %c0_44, %c0_45], %65 {strides = array<i32>} : memref<4x2x16x128xbf16, #tpu.memory_space<vmem>>, vector<1x1x16x128xbf16>,
      %66 = vector.extract_strided_slice %53 {offsets = [48, 0], sizes = [16, 128], strides = [1, 1]} : vector<64x128xbf16> to vector<16x128xbf16>
      %c3_46 = arith.constant 3 : index
      %c1_47 = arith.constant 1 : index
      %c0_48 = arith.constant 0 : index
      %c0_49 = arith.constant 0 : index
      %67 = vector.load %arg9[%c3_46, %c1_47, %c0_48, %c0_49] : memref<4x2x16x128xbf16, #tpu.memory_space<vmem>>, vector<1x1x16x128xbf16>
      %68 = vector.shape_cast %67 : vector<1x1x16x128xbf16> to vector<16x128xbf16>
      %69 = vector.shape_cast %66 : vector<16x128xbf16> to vector<1x1x16x128xbf16>
      tpu.vector_store %arg9[%c3_46, %c1_47, %c0_48, %c0_49], %69 {strides = array<i32>} : memref<4x2x16x128xbf16, #tpu.memory_space<vmem>>, vector<1x1x16x128xbf16>,
      %c0_50 = arith.constant 0 : index
      %c0_51 = arith.constant 0 : index
      %70 = vector.load %arg5[%c0_50, %c0_51] : memref<1x128xf32, #tpu.memory_space<vmem>>, vector<1x128xf32>
      %71 = vector.shape_cast %70 : vector<1x128xf32> to vector<1x128xf32>
      %72 = vector.broadcast %71 : vector<1x128xf32> to vector<2x128xf32>
      %c0_52 = arith.constant 0 : index
      %c0_53 = arith.constant 0 : index
      %73 = vector.load %arg10[%c0_52, %c0_53] : memref<2x128xf32, #tpu.memory_space<vmem>>, vector<2x128xf32>
      tpu.vector_store %arg10[%c0_52, %c0_53], %72 {strides = array<i32>} : memref<2x128xf32, #tpu.memory_space<vmem>>, vector<2x128xf32>,
    } else {
    }
    %3 = arith.index_cast %arg0 : i32 to index
    %c0 = arith.constant 0 : index
    %c0_1 = arith.constant 0 : index
    %c0_2 = arith.constant 0 : index
    %4 = vector.load %arg9[%3, %c0, %c0_1, %c0_2] : memref<4x2x16x128xbf16, #tpu.memory_space<vmem>>, vector<1x2x16x128xbf16>
    %5 = vector.shape_cast %4 : vector<1x2x16x128xbf16> to vector<2x16x128xbf16>
    %6 = vector.shape_cast %5 : vector<2x16x128xbf16> to vector<2x2048xbf16>
    %c0_3 = arith.constant 0 : index
    %c0_4 = arith.constant 0 : index
    %7 = vector.load %arg10[%c0_3, %c0_4] : memref<2x128xf32, #tpu.memory_space<vmem>>, vector<2x128xf32>
    %c0_5 = arith.constant 0 : index
    %c0_6 = arith.constant 0 : index
    %8 = vector.load %arg4[%c0_5, %c0_6] : memref<2048x128xbf16, #tpu.memory_space<vmem>>, vector<2048x128xbf16>
    %cst = arith.constant dense<0.000000e+00> : vector<2x128xf32>
    %9 = tpu.matmul %6, %8, %cst {dimension_numbers = #tpu.dot_dimension_numbers<[1], [0], [0], [1], [0, 0, 1, 1], [], []>} : vector<2x2048xbf16>, vector<2048x128xbf16>, vector<2x128xf32> -> vector<2x128xf32>
    %10 = arith.addf %7, %9 : vector<2x128xf32>
    %c0_7 = arith.constant 0 : index
    %c0_8 = arith.constant 0 : index
    %11 = vector.load %arg10[%c0_7, %c0_8] : memref<2x128xf32, #tpu.memory_space<vmem>>, vector<2x128xf32>
    tpu.vector_store %arg10[%c0_7, %c0_8], %10 {strides = array<i32>} : memref<2x128xf32, #tpu.memory_space<vmem>>, vector<2x128xf32>,
    %c3_i32 = arith.constant 3 : i32
    %12 = arith.cmpi eq, %arg0, %c3_i32 : i32
    %13 = arith.extui %12 : i1 to i32
    %c0_i32_9 = arith.constant 0 : i32
    %14 = arith.cmpi ne, %13, %c0_i32_9 : i32
    scf.if %14 {
      %c0_10 = arith.constant 0 : index
      %c0_11 = arith.constant 0 : index
      %15 = vector.load %arg10[%c0_10, %c0_11] : memref<2x128xf32, #tpu.memory_space<vmem>>, vector<2x128xf32>
      %cst_12 = arith.constant 0.000000e+00 : f32
      %16 = vector.broadcast %cst_12 : f32 to vector<2x128xf32>
      %17 = arith.cmpf ogt, %15, %16 : vector<2x128xf32>
      %cst_13 = arith.constant 0.000000e+00 : f32
      %18 = vector.broadcast %cst_13 : f32 to vector<2x128xf32>
      %19 = arith.minimumf %15, %18 : vector<2x128xf32>
      %20 = math.exp %19 : vector<2x128xf32>
      %cst_14 = arith.constant 1.000000e+00 : f32
      %21 = vector.broadcast %cst_14 : f32 to vector<2x128xf32>
      %22 = arith.subf %20, %21 : vector<2x128xf32>
      %23 = arith.select %17, %15, %22 : vector<2x128xi1>, vector<2x128xf32>
      %c0_15 = arith.constant 0 : index
      %c0_16 = arith.constant 0 : index
      %24 = vector.load %arg6[%c0_15, %c0_16] : memref<128x5xf32, #tpu.memory_space<vmem>>, vector<128x5xf32>
      %cst_17 = arith.constant dense<0.000000e+00> : vector<2x5xf32>
      %25 = tpu.matmul %23, %24, %cst_17 {dimension_numbers = #tpu.dot_dimension_numbers<[1], [0], [0], [1], [0, 0, 1, 1], [], []>} : vector<2x128xf32>, vector<128x5xf32>, vector<2x5xf32> -> vector<2x5xf32>
      %c0_18 = arith.constant 0 : index
      %c0_19 = arith.constant 0 : index
      %26 = vector.load %arg7[%c0_18, %c0_19] : memref<1x5xf32, #tpu.memory_space<vmem>>, vector<1x5xf32>
      %27 = vector.broadcast %26 : vector<1x5xf32> to vector<2x5xf32>
      %28 = arith.addf %25, %27 : vector<2x5xf32>
      %cst_20 = arith.constant dense<0xFF800000> : vector<2xf32>
      %29 = vector.multi_reduction <maximumf>, %28, %cst_20 [1] : vector<2x5xf32> to vector<2xf32>
      %30 = vector.shape_cast %29 : vector<2xf32> to vector<2x1xf32>
      %31 = vector.broadcast %30 : vector<2x1xf32> to vector<2x5xf32>
      %32 = arith.subf %28, %31 : vector<2x5xf32>
      %33 = math.exp %32 : vector<2x5xf32>
      %cst_21 = arith.constant dense<0.000000e+00> : vector<2xf32>
      %34 = vector.multi_reduction <add>, %33, %cst_21 [1] : vector<2x5xf32> to vector<2xf32>
      %35 = vector.shape_cast %34 : vector<2xf32> to vector<2x1xf32>
      %36 = tpu.reciprocal %35 {approx = true} : vector<2x1xf32> -> vector<2x1xf32>
      %37 = arith.mulf %35, %36 : vector<2x1xf32>
      %cst_22 = arith.constant 2.000000e+00 : f32
      %38 = vector.broadcast %cst_22 : f32 to vector<2x1xf32>
      %39 = arith.subf %38, %37 : vector<2x1xf32>
      %40 = arith.mulf %36, %39 : vector<2x1xf32>
      %41 = vector.broadcast %40 : vector<2x1xf32> to vector<2x5xf32>
      %42 = arith.mulf %33, %41 : vector<2x5xf32>
      %43 = math.exp %42 : vector<2x5xf32>
      %cst_23 = arith.constant dense<0.000000e+00> : vector<2xf32>
      %44 = vector.multi_reduction <add>, %43, %cst_23 [1] : vector<2x5xf32> to vector<2xf32>
      %45 = vector.shape_cast %44 : vector<2xf32> to vector<2x1xf32>
      %46 = math.log %45 : vector<2x1xf32>
      %47 = vector.broadcast %46 : vector<2x1xf32> to vector<2x5xf32>
      %48 = arith.subf %42, %47 : vector<2x5xf32>
      %c0_24 = arith.constant 0 : index
      %c0_25 = arith.constant 0 : index
      %49 = vector.load %arg8[%c0_24, %c0_25] : memref<2x5xf32, #tpu.memory_space<vmem>>, vector<2x5xf32>
      tpu.vector_store %arg8[%c0_24, %c0_25], %48 {strides = array<i32>} : memref<2x5xf32, #tpu.memory_space<vmem>>, vector<2x5xf32>,
    } else {
    }
    return
  }
  func.func @transform_0(%arg0: i32) -> (i32, i32) {
    %c0_i32 = arith.constant 0 : i32
    %c0_i32_0 = arith.constant 0 : i32
    %c0_i32_1 = arith.constant 0 : i32
    return %c0_i32, %c0_i32_0 : i32, i32
  }
  func.func @transform_1(%arg0: i32) -> (i32, i32) {
    %c0_i32 = arith.constant 0 : i32
    %c0_i32_0 = arith.constant 0 : i32
    %c0_i32_1 = arith.constant 0 : i32
    return %c0_i32, %c0_i32_0 : i32, i32
  }
  func.func @transform_2(%arg0: i32) -> (i32, i32) {
    %c0_i32 = arith.constant 0 : i32
    %c0_i32_0 = arith.constant 0 : i32
    %c0_i32_1 = arith.constant 0 : i32
    return %c0_i32, %c0_i32_0 : i32, i32
  }
  func.func @transform_3(%arg0: i32) -> (i32, i32) {
    %c0_i32 = arith.constant 0 : i32
    %c0_i32_0 = arith.constant 0 : i32
    return %arg0, %c0_i32 : i32, i32
  }
  func.func @transform_4(%arg0: i32) -> (i32, i32) {
    %c0_i32 = arith.constant 0 : i32
    %c0_i32_0 = arith.constant 0 : i32
    %c0_i32_1 = arith.constant 0 : i32
    return %c0_i32, %c0_i32_0 : i32, i32
  }
  func.func @transform_5(%arg0: i32) -> (i32, i32) {
    %c0_i32 = arith.constant 0 : i32
    %c0_i32_0 = arith.constant 0 : i32
    %c0_i32_1 = arith.constant 0 : i32
    return %c0_i32, %c0_i32_0 : i32, i32
  }
  func.func @transform_6(%arg0: i32) -> (i32, i32) {
    %c0_i32 = arith.constant 0 : i32
    %c0_i32_0 = arith.constant 0 : i32
    %c0_i32_1 = arith.constant 0 : i32
    return %c0_i32, %c0_i32_0 : i32, i32
  }
  func.func @transform_7(%arg0: i32) -> (i32, i32) {
    %c0_i32 = arith.constant 0 : i32
    %c0_i32_0 = arith.constant 0 : i32
    %c0_i32_1 = arith.constant 0 : i32
    return %c0_i32, %c0_i32_0 : i32, i32
  }
}

</mosaic_0001>

<bundles_post_ra>
// kernel: wave_fft_net_forward.1
= control target key start
LH: loop header
LB: loop body
LE: loop exit
PB: predicated region body
PF: predicated region fallthrough
CT: control target
= control target key end

     0   :  { %s4640_s0 = inlined_call_operand.vmem [shape: f32[64,33], index: 0, kind: input, shape index: {}]   ;;  %s4641_s1 = inlined_call_operand.hbm [shape: f32[33,128], index: 1, kind: input, shape index: {}]   ;;  %s4642_s2 = inlined_call_operand.vmem [shape: f32[128,32], index: 2, kind: input, shape index: {}]   ;;  %s4643_s3 = inlined_call_operand.hbm [shape: bf16[8192,128], index: 3, kind: input, shape index: {}]   ;;  %s4644_s4 = inlined_call_operand.hbm [shape: f32[1,128], index: 4, kind: input, shape index: {}]   ;;  %s4645_s5 = inlined_call_operand.vmem [shape: f32[128,5], index: 5, kind: input, shape index: {}]   ;;  %s4646_s6 = inlined_call_operand.hbm [shape: f32[1,5], index: 6, kind: input, shape index: {}]   ;;  %s4647_s7 = inlined_call_operand.hbm [shape: f32[2,5], index: 7, kind: output, shape index: {}]  }
   0x1   :  { %4655 = sst [smem:[#allocation20_spill]] %s4644_s4 }
   0x2   :  { %4656 = sst [smem:[#allocation21_spill]] %s4647_s7 }
   0x3   :  { %12 = vsyncpa [#allocation5], 0 }
   0x4   :  { %13 = vsyncpa [#allocation8], 0 }
   0x5   :  { %15 = vsyncpa [#allocation8 + $0x1], 0 }
   0x6   :  { %16 = vsyncpa [#allocation11], 0 }
   0x7   :  { %17 = vsyncpa [#allocation6], 0  ;;  %s3891_s24 = smov 0   ;;  %s3893_s25 = smov 0  }
   0x8   :  { %s3895_s26 = smov 0   ;;  %s3897_s27 = smov 0  }
   0x9 LB: > { %s3910_s28 = sadd.s32 4294967295, %s3834_s27   ;;  %s3913_s29 = sadd.s32 1, %s3834_s27   ;;  %s3834_s27 = sphi %s3897_s27, %s4677_s27   ;;  %s3830_s26 = sphi %s3895_s26, %s4681_s26   ;;  %s3826_s25 = sphi %s3893_s25, %s4680_s25   ;;  %s3822_s24 = sphi %s3891_s24, %s4679_s24  }
   0xa   : > { %4657 = sst [smem:[#allocation18_spill]] %s3913_s29  ;;  %s90_s30 = ssub.s32 %s3834_s27, %s3913_s29 }
   0xb   : > { %s93_s8 = sadd.s32 1, %s3830_s26  ;;  %p91_p0 = scmp.eq.s32.totalorder %s90_s30, 0 }
   0xc   : > { %p100_p1 = scmp.ne.s32.totalorder %s3830_s26, %s3826_s25  ;;  %p101_p2 = scmp.eq.s32.totalorder %s3834_s27, 0 }
   0xd   : > { %p106_p3 = scmp.ne.s32.totalorder %s3826_s25, %s3822_s24  ;;  %p4648_p5 = scmp.eq.s32.totalorder %s3910_s28, 0 }
   0xe   : > { %s3923_s9 = scalar_select %p91_p0, %s3830_s26, %s93_s8  }
   0xf   : > { %p3925_p4 = por %p101_p2, %p100_p1  ;;  %p2771_p6 = scmp.ge.s32.totalorder %s3834_s27, 1 }
  0x10   : > { %4658 = sst [smem:[#allocation19_spill]] %s3923_s9  ;;  %p201_p7 = scmp.lt.s32.totalorder %s3834_s27, 5 }
  0x11   : > { %p3934_p8 = por %p4648_p5, %p106_p3  ;;  %s3836_s13 = smov [#allocation9]  }
  0x12   : > { %p3939_p10 = pnand %p2771_p6, %p201_p7  ;;  %s233_s14 = sshll.u32 %s3836_s13, 4  ;;  %s234_s14 = int_to_ptr.vmem [resolvable:$true] %s233_s14 }
  0x13   : > { %s4660_s11 = scalar_select %p3934_p8, 1, 0 }
  0x14   : > { %s4661_s12 = scalar_select %p3939_p10, 1, 0 }
  0x15   : > { %p3405_p11 = pneg %p3939_p10  ;;  %p3422_p12 = scmp.lt.s32.totalorder %s3834_s27, 4 }
  0x16   : > { %s3837_s16 = smov [#allocation4]   ;;  %s4664_s4 = sld [smem:[#allocation20_spill]] }
  0x17   : > { %p3948_p13 = pnand %p3405_p11, %p4648_p5  ;;  %s216_s17 = sshll.u32 %s3837_s16, 4  ;;  %s3958_s17 = int_to_ptr.vmem [resolvable:$true] %s216_s17 }
  0x18   : > { %p3954_p0 = pnand %p3422_p12, %p3925_p4 }
  0x19   : > { %p3968_p2 = pneg %p3948_p13 }
  0x1a   : > { %s4663_s18 = scalar_select %p3954_p0, 1, 0 }
  0x1c   : > { %s3644_s21 = scalar_lea.hbm %s4664_s4, 16 }
  0x1d   : > { %p3645_p1 = scmp.ne.s32.totalorder %s4664_s4, %s3644_s21  ;;  %p3651_p6 = scmp.lt.u32.totalorder %s3644_s21, %s4664_s4 }
  0x1f   : > { %p3647_p3 = pnand %p3968_p2, %p3645_p1 }
  0x21   : > { %p3648_p4 = pneg %p3647_p3 }
  0x23   : > { %p3653_p7 = pnand %p3651_p6, %p3648_p4 }
  0x25   : > { %3656 = shalt.err (!%p3653_p7)
}
  0x26   : > { %s3657_s10 = scalar_lea.vmem %s234_s14, 16  ;;  %s3664_s13 = scalar_lea.vmem %s234_s14, 32 }
  0x27   : > { %p3658_p11 = scmp.ne.s32.totalorder %s234_s14, %s3657_s10  ;;  %p3665_p5 = scmp.lt.s32.totalorder %s234_s14, %s234_s14 }
  0x28   : > { %p3666_p8 = scmp.lt.s32.totalorder %s3664_s13, %s3657_s10 }
  0x29   : > { %p3660_p12 = pnand %p3658_p11, %p3968_p2 }
  0x2a   : > { %p3667_p10 = por %p3666_p8, %p3665_p5 }
  0x2b   : > { %p3661_p9 = pneg %p3660_p12 }
  0x2d   : > { %p3668_p0 = pnand %p3667_p10, %p3661_p9 }
  0x2f   : > { %3671 = shalt.err (!%p3668_p0)
}
  0x30   : > { %3411 = dma.hbm_to_vmem [thread:$0]  (!%p3948_p13), %s4664_s4, 16, %s234_s14, [#allocation8]  }
  0x31   : > { %s3672_s22 = scalar_lea.hbm %s4641_s1, 640 }
  0x32   : > { %p3673_p1 = scmp.ne.s32.totalorder %s4641_s1, %s3672_s22  ;;  %p3679_p8 = scmp.lt.u32.totalorder %s3672_s22, %s4641_s1 }
  0x34   : > { %p3675_p3 = pnand %p3673_p1, %p3968_p2 }
  0x36   : > { %p3676_p5 = pneg %p3675_p3 }
  0x38   : > { %p3681_p9 = pnand %p3679_p8, %p3676_p5 }
  0x3a   : > { %3684 = shalt.err (!%p3681_p9)
}
  0x3b   : > { %s3685_s14 = scalar_lea.vmem %s3958_s17, 640  ;;  %p3693_p6 = scmp.lt.s32.totalorder %s3958_s17, %s3958_s17 }
  0x3c   : > { %p3686_p10 = scmp.ne.s32.totalorder %s3958_s17, %s3685_s14  ;;  %p3694_p7 = scmp.lt.s32.totalorder %s3685_s14, %s3685_s14 }
  0x3e   : > { %p3688_p0 = pnand %p3686_p10, %p3968_p2  ;;  %p3695_p11 = por %p3694_p7, %p3693_p6 }
  0x40   : > { %p3689_p4 = pneg %p3688_p0 }
  0x42   : > { %p3696_p12 = pnand %p3695_p11, %p3689_p4 }
  0x44   : > { %3699 = shalt.err (!%p3696_p12)
}
  0x45   : > { %s3838_s13 = smov 128   ;;  %s3839_s16 = smov 8  }
  0x46   : > { %3408 = dma.hbm_to_vmem [thread:$0]  (!%p3948_p13), %s4641_s1, 640, %s3958_s17, [#allocation5], %s3838_s13, %s3838_s13, %s3839_s16  }
  0x47   : > { %s258_s21 = sand.u32 1, %s3834_s27   ;;  %s3840_s22 = smov [#allocation10]  }
  0x48   : > { %s247_s23 = sshll.u32 %s3840_s22, 4  ;;  %s260_s30 = sand.u32 1, %s3830_s26   ;;  %s248_s23 = int_to_ptr.vmem [resolvable:$true] %s247_s23 }
  0x49   : > { %s3700_s14 = scalar_lea.hbm %s4646_s6, 16 }
  0x4a   : > { %p3701_p1 = scmp.ne.s32.totalorder %s4646_s6, %s3700_s14  ;;  %p3707_p8 = scmp.lt.u32.totalorder %s3700_s14, %s4646_s6 }
  0x4c   : > { %p3703_p3 = pnand %p3701_p1, %p3968_p2 }
  0x4e   : > { %p3704_p5 = pneg %p3703_p3 }
  0x50   : > { %p3709_p9 = pnand %p3707_p8, %p3704_p5 }
  0x52   : > { %3712 = shalt.err (!%p3709_p9)
}
  0x53   : > { %s3713_s17 = scalar_lea.vmem %s248_s23, 16  ;;  %s3720_s13 = scalar_lea.vmem %s248_s23, 32 }
  0x54   : > { %p3714_p10 = scmp.ne.s32.totalorder %s248_s23, %s3713_s17  ;;  %p3721_p6 = scmp.lt.s32.totalorder %s248_s23, %s248_s23 }
  0x55   : > { %p3722_p7 = scmp.lt.s32.totalorder %s3720_s13, %s3713_s17 }
  0x56   : > { %p3716_p0 = pnand %p3714_p10, %p3968_p2 }
  0x57   : > { %p3723_p11 = por %p3722_p7, %p3721_p6 }
  0x58   : > { %p3717_p4 = pneg %p3716_p0 }
  0x5a   : > { %p3724_p12 = pnand %p3723_p11, %p3717_p4 }
  0x5c   : > { %3727 = shalt.err (!%p3724_p12)
}
  0x5d   : > { %3414 = dma.hbm_to_vmem [thread:$0]  (!%p3948_p13), %s4646_s6, 16, %s248_s23, [#allocation11]  }
  0x5e   : > { %s2776_s7 = sshll.u32 %s260_s30, 10  ;;  %s2964_s29 = sshll.u32 %s3834_s27, 14 }
  0x5f   : > { %s4031_s19 = scalar_lea.hbm %s4643_s3, %s2964_s29  ;;  %s262_s20 = scalar_lea.vmem [#allocation7], %s2776_s7 }
  0x60   : > { %s269_s15 = sshll.u32 %s262_s20, 4  ;;  %s4035_s22 = scalar_lea.sflag [#allocation8], %s258_s21  ;;  %s4033_s15 = int_to_ptr.vmem [resolvable:$true] %s269_s15 }
  0x61   : > { %s3728_s8 = scalar_lea.hbm %s4031_s19, 16384  ;;  %p4666_p13 = scmp.ne.s32.totalorder %s4663_s18, 0 }
  0x62   : > { %p3729_p2 = scmp.ne.s32.totalorder %s4031_s19, %s3728_s8  ;;  %s3733_s30 = scalar_lea.hbm %s4643_s3, 65536 }
  0x63   : > { %p3730_p1 = pneg %p4666_p13  ;;  %p3734_p8 = scmp.lt.u32.totalorder %s4031_s19, %s4643_s3 }
  0x64   : > { %p3735_p9 = scmp.lt.u32.totalorder %s3733_s30, %s3728_s8  ;;  %p3737_p0 = scmp.lt.u32.totalorder %s3728_s8, %s4031_s19 }
  0x65   : > { %p3731_p3 = pnand %p3730_p1, %p3729_p2 }
  0x66   : > { %p3736_p10 = por %p3735_p9, %p3734_p8 }
  0x67   : > { %p3732_p5 = pneg %p3731_p3 }
  0x68   : > { %p3738_p4 = por %p3737_p0, %p3736_p10 }
  0x6a   : > { %p3739_p6 = pnand %p3738_p4, %p3732_p5 }
  0x6c   : > { %3742 = shalt.err (!%p3739_p6)
}
  0x6d   : > { %s3743_s21 = scalar_lea.vmem %s4033_s15, 16384  ;;  %s3841_s17 = smov [#allocation7]  }
  0x6e   : > { %p3744_p7 = scmp.ne.s32.totalorder %s4033_s15, %s3743_s21  ;;  %s3748_s13 = sshll.u32 %s3841_s17, 4  ;;  %s3749_s13 = int_to_ptr.vmem [resolvable:$false] %s3748_s13 }
  0x6f   : > { %s3750_s4 = scalar_lea.vmem %s3749_s13, 32768  ;;  %p3751_p2 = scmp.lt.s32.totalorder %s4033_s15, %s3749_s13 }
  0x70   : > { %p3746_p11 = pnand %p3744_p7, %p3730_p1  ;;  %p3752_p3 = scmp.lt.s32.totalorder %s3750_s4, %s3743_s21 }
  0x72   : > { %p3747_p12 = pneg %p3746_p11  ;;  %p3753_p8 = por %p3752_p3, %p3751_p2 }
  0x74   : > { %p3754_p9 = pnand %p3753_p8, %p3747_p12 }
  0x76   : > { %3757 = shalt.err (!%p3754_p9)
}
  0x77   : > { %s3842_s9 = smov 64   ;;  %s3843_s7 = smov 4  }
  0x78   : > { %3418 = dma.hbm_to_vmem [thread:$0]  (!%p4666_p13), %s4031_s19, 16384, %s4033_s15, %s4035_s22, %s3842_s9, %s3842_s9, %s3843_s7  }
  0x79   : > { %p4667_p1 = scmp.ne.s32.totalorder %s4661_s12, 0 }
  0x7a   : > { %p4668_p5 = scmp.eq.s32.totalorder (!%p4667_p1), %s3910_s28, 0 }
  0x7b   : > { %281 = sbr.rel (%p4667_p1) target bundleno = 1772 (0x6ec), region = 48 }
  0x82   : > { %3801 = dma.done.wait (%p4668_p5), [#allocation5], 640   ;;  %p4669_p10 = pmov %p4668_p5 }
  0x83   : > { %s287_s29 = sand.u32 1, %s3910_s28   ;;  %s289_s24 = sand.u32 1, %s3826_s25  }
  0x84   : > { %3803 = vsyncadd (%p4669_p10), [#allocation5], 4294966656  ;;  %s2781_s16 = sshll.u32 %s289_s24, 10  ;;  %s288_s20 = scalar_lea.sflag [#allocation8], %s287_s29 }
  0x85   : > { %s4071_s8 = scalar_lea.vmem [#allocation7], %s2781_s16  ;;  %p4670_p0 = scmp.ne.s32.totalorder %s4660_s11, 0 }
  0x87   : > { %3805 = dma.done.wait (%p4670_p0), %s288_s20, 16384  }
  0x88   : > { %3807 = vsyncadd (%p4670_p0), %s288_s20, 4294950912  ;;  %p4671_p13 = pmov %p4668_p5 }
  0x89   : > { %p4672_p4 = pmov %p4668_p5 }
  0x8a   : > { %3809 = dma.done.wait (%p4671_p13), [#allocation8], 16  }
  0x8b   : > { %3811 = vsyncadd (%p4672_p4), [#allocation8], 4294967280  ;;  %p4673_p6 = pmov %p4672_p4 }
  0x8c   : > { %p4674_p7 = pmov %p4672_p4 }
  0x8d   : > { %3813 = dma.done.wait (%p4673_p6), [#allocation11], 16  }
  0x8e   : > { %3815 = vsyncadd (%p4674_p7), [#allocation11], 4294967280  ;;  %p4675_p11 = scmp.ne.s32.totalorder %s3910_s28, 0 }
  0x8f   : > { %v339_v0 = vld [vmem:[#allocation4] sm:$0xff] (!%p4675_p11)  ;;  %v340_v1 = vld [vmem:[#allocation4 + $0x8] sm:$0xff] (!%p4675_p11)  ;;  %v341_v2 = vld [vmem:[#allocation4 + $0x10] sm:$0xff] (!%p4675_p11)  ;;  %vm344_vm0 = vcmask (!%p4675_p11), 269312   ;;  %vm369_vm1 = vcmask (!%p4675_p11), 1040384   ;;  %vm494_vm2 = vcmask (!%p4675_p11), 261120  }
  0x90   : > { %330 = sbr.rel (%p4675_p11) target bundleno = 658 (0x292), region = 68  ;;  %v3333_v3 = vpack.c.bf16 (!%p4675_p11), %v340_v1, %v339_v0  ;;  %v342_v4 = vld [vmem:[#allocation4 + $0x18] sm:$0xff] (!%p4675_p11)  ;;  %v343_v8 = vld [vmem:[#allocation4 + $0x20] sm:$0x1] (!%p4675_p11)  ;;  %v332_v9 = vld [vmem:[%s4640_s0 + $0x8] sm:$0xff] (!%p4675_p11) }
  0x91   : > { %v331_v5 = vld [vmem:[%s4640_s0] sm:$0xff] (!%p4675_p11)  ;;  %v3337_v6 = vpack.c.bf16 (!%p4675_p11), %v342_v4, %v341_v2  ;;  %v336_v10 = vld [vmem:[%s4640_s0 + $0x28] sm:$0xff] (!%p4675_p11)  ;;  %v333_v11 = vld [vmem:[%s4640_s0 + $0x10] sm:$0xff] (!%p4675_p11) }
  0x92   : > { %3222 = vmatprep.mubr.msk.f32.mxu0 (!%p4675_p11), %vm344_vm0, %v331_v5  ;;  %3334 = vmatprep.subr.bf16.mxu0 (!%p4675_p11), %v3333_v3  ;;  %v335_v7 = vld [vmem:[%s4640_s0 + $0x20] sm:$0xff] (!%p4675_p11)  ;;  %v337_v12 = vld [vmem:[%s4640_s0 + $0x30] sm:$0xff] (!%p4675_p11)  ;;  %v334_v13 = vld [vmem:[%s4640_s0 + $0x18] sm:$0xff] (!%p4675_p11) }
  0x93   : > { %3381 = vmatprep.subr.bf16.mxu1 (!%p4675_p11), %v3333_v3  ;;  %3336 = vmatpush3.bf16.msra.mxu0 (!%p4675_p11), %v3333_v3  ;;  %v338_v14 = vld [vmem:[%s4640_s0 + $0x38] sm:$0xff] (!%p4675_p11)  ;;  %v478_v15 = vld [vmem:[%s4642_s2] sm:$0xff] (!%p4675_p11)  ;;  %v479_v28 = vld [vmem:[%s4642_s2 + $0x8] sm:$0xff] (!%p4675_p11) }
  0x94   : > { %3384 = vmatpush3.bf16.msra.mxu1 (!%p4675_p11), %v3333_v3  ;;  %3338 = vmatprep.subr.bf16.mxu0 (!%p4675_p11), %v3337_v6  ;;  %v480_v29 = vld [vmem:[%s4642_s2 + $0x10] sm:$0xff] (!%p4675_p11)  ;;  %v481_v30 = vld [vmem:[%s4642_s2 + $0x18] sm:$0xff] (!%p4675_p11)  ;;  %v482_v31 = vld [vmem:[%s4642_s2 + $0x20] sm:$0xff] (!%p4675_p11) }
  0x95   : > { %3382 = vmatprep.subr.bf16.mxu1 (!%p4675_p11), %v3337_v6  ;;  %3228 = vmatprep.mubr.msk.f32.mxu1 (!%p4675_p11), %vm344_vm0, %v335_v7  ;;  %v483_v32 = vld [vmem:[%s4642_s2 + $0x28] sm:$0xff] (!%p4675_p11)  ;;  %v484_v33 = vld [vmem:[%s4642_s2 + $0x30] sm:$0xff] (!%p4675_p11)  ;;  %v485_v34 = vld [vmem:[%s4642_s2 + $0x38] sm:$0xff] (!%p4675_p11) }
  0x96   : > { %v486_v35 = vld [vmem:[%s4642_s2 + $0x40] sm:$0xff] (!%p4675_p11)  ;;  %v487_v36 = vld [vmem:[%s4642_s2 + $0x48] sm:$0xff] (!%p4675_p11)  ;;  %v488_v37 = vld [vmem:[%s4642_s2 + $0x50] sm:$0xff] (!%p4675_p11) }
  0x97   : > { %3340 = vmatpush3.bf16.msra.mxu0 %v3337_v6  ;;  %v489_v38 = vld [vmem:[%s4642_s2 + $0x58] sm:$0xff]  ;;  %v490_v39 = vld [vmem:[%s4642_s2 + $0x60] sm:$0xff]  ;;  %v491_v40 = vld [vmem:[%s4642_s2 + $0x68] sm:$0xff] }
  0x98   : > { %3385 = vmatpush3.bf16.msra.mxu1 %v3337_v6  ;;  %3220 = vmatprep.subr.msk.mxu0 %vm369_vm1, %v343_v8  ;;  %v492_v41 = vld [vmem:[%s4642_s2 + $0x70] sm:$0xff]  ;;  %v493_v42 = vld [vmem:[%s4642_s2 + $0x78] sm:$0xff]  ;;  %v2826_v43 = vld [vmem:[#allocation9] ss:$0 sm:$0xff] }
  0x99   : > { %3383 = vmatprep.subr.msk.mxu1 %vm369_vm1, %v343_v8  ;;  %1087 = vst [vmem:[#allocation3] sm:$0x3] %v2826_v43 }
  0x9b   : > { %3221 = vmatpush3.msk.msra.mxu0 %vm369_vm1, %v343_v8 }
  0x9c   : > { %3386 = vmatpush3.msk.msra.mxu1 %vm369_vm1, %v343_v8  ;;  %3223 = vmatmul.mubr.msk.f32.vlgmr.msra.gmra.mrb[0].mxu0 %vm344_vm0, %v332_v9 }
  0x9d   : > { %3229 = vmatmul.mubr.msk.f32.vlgmr.msra.gmra.mrb[0].mxu1 %vm344_vm0, %v336_v10  ;;  %3225 = vmatprep.mubr.msk.f32.mxu0 %vm344_vm0, %v333_v11 }
  0x9e   : > { %3231 = vmatprep.mubr.msk.f32.mxu1 %vm344_vm0, %v337_v12 }
  0xa0   : > { %3226 = vmatmul.mubr.msk.f32.gmra.mrb[2].mxu0 %vm344_vm0, %v334_v13 }
  0xa1   : > { %3232 = vmatmul.mubr.msk.f32.gmra.mrb[2].mxu1 %vm344_vm0, %v338_v14  ;;  %3274 = vmatprep.mubr.msk.f32.mxu0 %vm494_vm2, %v478_v15 }
  0xa2   : > { %3242 = vmatprep.mubr.msk.f32.mxu1 %vm494_vm2, %v478_v15 }
 0x16f   : > { %v3224_v16 = vpop.f32.mrb[0].mxu0 }
 0x170   : > { %v3230_v17 = vpop.f32.mrb[0].mxu1  ;;  %v439_v18 = vpop.f32.mrb[1].mxu0 }
 0x171   : > { %v459_v19 = vpop.f32.mrb[1].mxu1  ;;  %v3341_v20 = vpack.c.bf16 %v3224_v16, %v439_v18 }
 0x172   : > { %v3349_v21 = vpack.c.bf16 %v3230_v17, %v459_v19 }
 0x173   : > { %v3227_v22 = vpop.f32.mrb[2].mxu0  ;;  %3342 = vmatprep.subr.bf16.mxu1 %v3341_v20 }
 0x174   : > { %v3233_v23 = vpop.f32.mrb[2].mxu1  ;;  %3350 = vmatprep.subr.bf16.mxu0 %v3349_v21  ;;  %v449_v24 = vpop.f32.mrb[3].mxu0  ;;  %3344 = vmatpush3.bf16.msra.mxu1 %v3341_v20 }
 0x175   : > { %v469_v25 = vpop.f32.mrb[3].mxu1  ;;  %3352 = vmatpush3.bf16.msra.mxu0 %v3349_v21  ;;  %v3345_v26 = vpack.c.bf16 %v3227_v22, %v449_v24 }
 0x176   : > { %v3353_v27 = vpack.c.bf16 %v3233_v23, %v469_v25 }
 0x177   : > { %3346 = vmatprep.subr.bf16.mxu1 %v3345_v26 }
 0x178   : > { %3354 = vmatprep.subr.bf16.mxu0 %v3353_v27  ;;  %3348 = vmatpush3.bf16.msra.mxu1 %v3345_v26 }
 0x179   : > { %3356 = vmatpush3.bf16.msra.mxu0 %v3353_v27 }
 0x17b   : > { %3243 = vmatmul.mubr.msk.f32.vlgmr.msra.gmra.mrb[4].mxu1 %vm494_vm2, %v479_v28 }
 0x17c   : > { %3275 = vmatmul.mubr.msk.f32.vlgmr.msra.gmra.mrb[4].mxu0 %vm494_vm2, %v479_v28  ;;  %3245 = vmatprep.mubr.msk.f32.mxu1 %vm494_vm2, %v480_v29 }
 0x17d   : > { %3277 = vmatprep.mubr.msk.f32.mxu0 %vm494_vm2, %v480_v29 }
 0x17f   : > { %3246 = vmatmul.mubr.msk.f32.gmra.mrb[6].mxu1 %vm494_vm2, %v481_v30 }
 0x180   : > { %3278 = vmatmul.mubr.msk.f32.gmra.mrb[6].mxu0 %vm494_vm2, %v481_v30  ;;  %3248 = vmatprep.mubr.msk.f32.mxu1 %vm494_vm2, %v482_v31 }
 0x181   : > { %3280 = vmatprep.mubr.msk.f32.mxu0 %vm494_vm2, %v482_v31 }
 0x183   : > { %3249 = vmatmul.mubr.msk.f32.gmra.mrb[8].mxu1 %vm494_vm2, %v483_v32 }
 0x184   : > { %3281 = vmatmul.mubr.msk.f32.gmra.mrb[8].mxu0 %vm494_vm2, %v483_v32  ;;  %3251 = vmatprep.mubr.msk.f32.mxu1 %vm494_vm2, %v484_v33 }
 0x185   : > { %3283 = vmatprep.mubr.msk.f32.mxu0 %vm494_vm2, %v484_v33 }
 0x187   : > { %3252 = vmatmul.mubr.msk.f32.gmra.mrb[10].mxu1 %vm494_vm2, %v485_v34 }
 0x188   : > { %3284 = vmatmul.mubr.msk.f32.gmra.mrb[10].mxu0 %vm494_vm2, %v485_v34  ;;  %3254 = vmatprep.mubr.msk.f32.mxu1 %vm494_vm2, %v486_v35 }
 0x189   : > { %3286 = vmatprep.mubr.msk.f32.mxu0 %vm494_vm2, %v486_v35 }
 0x18b   : > { %3255 = vmatmul.mubr.msk.f32.gmra.mrb[12].mxu1 %vm494_vm2, %v487_v36 }
 0x18c   : > { %3287 = vmatmul.mubr.msk.f32.gmra.mrb[12].mxu0 %vm494_vm2, %v487_v36  ;;  %3257 = vmatprep.mubr.msk.f32.mxu1 %vm494_vm2, %v488_v37 }
 0x18d   : > { %3289 = vmatprep.mubr.msk.f32.mxu0 %vm494_vm2, %v488_v37 }
 0x18f   : > { %3258 = vmatmul.mubr.msk.f32.gmra.mrb[14].mxu1 %vm494_vm2, %v489_v38 }
 0x190   : > { %3290 = vmatmul.mubr.msk.f32.gmra.mrb[14].mxu0 %vm494_vm2, %v489_v38  ;;  %3260 = vmatprep.mubr.msk.f32.mxu1 %vm494_vm2, %v490_v39 }
 0x191   : > { %3292 = vmatprep.mubr.msk.f32.mxu0 %vm494_vm2, %v490_v39 }
 0x193   : > { %3261 = vmatmul.mubr.msk.f32.gmra.mrb[16].mxu1 %vm494_vm2, %v491_v40 }
 0x194   : > { %3293 = vmatmul.mubr.msk.f32.gmra.mrb[16].mxu0 %vm494_vm2, %v491_v40  ;;  %3263 = vmatprep.mubr.msk.f32.mxu1 %vm494_vm2, %v492_v41 }
 0x195   : > { %3295 = vmatprep.mubr.msk.f32.mxu0 %vm494_vm2, %v492_v41 }
 0x197   : > { %3264 = vmatmul.mubr.msk.f32.gmra.mrb[18].mxu1 %vm494_vm2, %v493_v42 }
 0x198   : > { %3296 = vmatmul.mubr.msk.f32.gmra.mrb[18].mxu0 %vm494_vm2, %v493_v42 }
 0x24e   : > { %v3244_v44 = vpop.f32.mrb[4].mxu1 }
 0x24f   : > { %v3276_v45 = vpop.f32.mrb[4].mxu0  ;;  %v609_v46 = vpop.f32.mrb[5].mxu1  ;;  %v689_v62 = vmul.f32 %v3244_v44, %v3244_v44 }
 0x250   : > { %v909_v47 = vpop.f32.mrb[5].mxu0  ;;  %v989_v63 = vmul.f32 %v3276_v45, %v3276_v45  ;;  %v688_v4 = vmul.f32 %v609_v46, %v609_v46 }
 0x251   : > { %v988_v5 = vmul.f32 %v909_v47, %v909_v47 }
 0x252   : > { %v3247_v48 = vpop.f32.mrb[6].mxu1 }
 0x253   : > { %v3279_v49 = vpop.f32.mrb[6].mxu0  ;;  %v619_v50 = vpop.f32.mrb[7].mxu1  ;;  %v691_v14 = vmul.f32 %v3247_v48, %v3247_v48 }
 0x254   : > { %v919_v51 = vpop.f32.mrb[7].mxu0  ;;  %v991_v15 = vmul.f32 %v3279_v49, %v3279_v49  ;;  %v690_v16 = vmul.f32 %v619_v50, %v619_v50 }
 0x255   : > { %v990_v19 = vmul.f32 %v919_v51, %v919_v51 }
 0x256   : > { %v3250_v52 = vpop.f32.mrb[8].mxu1 }
 0x257   : > { %v3282_v53 = vpop.f32.mrb[8].mxu0  ;;  %v629_v54 = vpop.f32.mrb[9].mxu1  ;;  %v693_v20 = vmul.f32 %v3250_v52, %v3250_v52 }
 0x258   : > { %v929_v55 = vpop.f32.mrb[9].mxu0  ;;  %v993_v21 = vmul.f32 %v3282_v53, %v3282_v53  ;;  %v692_v22 = vmul.f32 %v629_v54, %v629_v54 }
 0x259   : > { %v992_v23 = vmul.f32 %v929_v55, %v929_v55 }
 0x25a   : > { %v3253_v56 = vpop.f32.mrb[10].mxu1 }
 0x25b   : > { %v3285_v57 = vpop.f32.mrb[10].mxu0  ;;  %v639_v58 = vpop.f32.mrb[11].mxu1  ;;  %v4209_v24 = vmul.f32 %v3253_v56, %v3253_v56 }
 0x25c   : > { %v939_v59 = vpop.f32.mrb[11].mxu0  ;;  %v4212_v25 = vmul.f32 %v3285_v57, %v3285_v57  ;;  %v4214_v26 = vmul.f32 %v639_v58, %v639_v58 }
 0x25d   : > { %v4216_v27 = vmul.f32 %v939_v59, %v939_v59 }
 0x25e   : > { %v3256_v60 = vpop.f32.mrb[12].mxu1 }
 0x25f   : > { %v3288_v61 = vpop.f32.mrb[12].mxu0  ;;  %v697_v0 = vmul.f32 %v3256_v60, %v3256_v60  ;;  %v649_v2 = vpop.f32.mrb[13].mxu1 }
 0x260   : > { %v997_v1 = vmul.f32 %v3288_v61, %v3288_v61  ;;  %v949_v3 = vpop.f32.mrb[13].mxu0  ;;  %v696_v6 = vmul.f32 %v649_v2, %v649_v2 }
 0x261   : > { %v996_v7 = vmul.f32 %v949_v3, %v949_v3  ;;  %v4199_v8 = vadd.f32 %v697_v0, %v689_v62 }
 0x262   : > { %v4201_v9 = vadd.f32 %v997_v1, %v989_v63  ;;  %v4203_v10 = vadd.f32 %v696_v6, %v688_v4  ;;  %v3259_v12 = vpop.f32.mrb[14].mxu1 }
 0x263   : > { %v4205_v11 = vadd.f32 %v996_v7, %v988_v5  ;;  %v3291_v13 = vpop.f32.mrb[14].mxu0  ;;  %3474 = vrsqrt.f32 %v4199_v8  ;;  %v659_v17 = vpop.f32.mrb[15].mxu1  ;;  %v699_v30 = vmul.f32 %v3259_v12, %v3259_v12  ;;  %vm721_vm3 = vcmp.eq.f32.partialorder %v4199_v8, inf }
 0x264   : > { %v959_v18 = vpop.f32.mrb[15].mxu0  ;;  %3476 = vrsqrt.f32 %v4201_v9  ;;  %v999_v31 = vmul.f32 %v3291_v13, %v3291_v13  ;;  %v698_v32 = vmul.f32 %v659_v17, %v659_v17  ;;  %vm723_vm4 = vcmp.eq.f32.partialorder %v4199_v8, 0.0 }
 0x265   : > { %3478 = vrsqrt.f32 %v4203_v10  ;;  %v998_v33 = vmul.f32 %v959_v18, %v959_v18  ;;  %v4219_v40 = vadd.f32 %v699_v30, %v691_v14  ;;  %v724_v50 = vand.u32 2147483648, %v4199_v8 }
 0x266   : > { %3480 = vrsqrt.f32 %v4205_v11  ;;  %v3262_v28 = vpop.f32.mrb[16].mxu1  ;;  %v4221_v41 = vadd.f32 %v999_v31, %v991_v15  ;;  %v4223_v42 = vadd.f32 %v698_v32, %v690_v16  ;;  %vm1021_vm5 = vcmp.eq.f32.partialorder %v4201_v9, inf }
 0x267   : > { %v3294_v29 = vpop.f32.mrb[16].mxu0  ;;  %v669_v34 = vpop.f32.mrb[17].mxu1  ;;  %v701_v36 = vmul.f32 %v3262_v28, %v3262_v28  ;;  %v4225_v43 = vadd.f32 %v998_v33, %v990_v19  ;;  %3482 = vrsqrt.f32 %v4219_v40  ;;  %vm1023_vm6 = vcmp.eq.f32.partialorder %v4201_v9, 0.0 }
 0x268   : > { %v969_v35 = vpop.f32.mrb[17].mxu0  ;;  %v1001_v37 = vmul.f32 %v3294_v29, %v3294_v29  ;;  %v700_v38 = vmul.f32 %v669_v34, %v669_v34  ;;  %v1024_v53 = vand.u32 2147483648, %v4201_v9  ;;  %3484 = vrsqrt.f32 %v4221_v41 }
 0x269   : > { %v1000_v39 = vmul.f32 %v969_v35, %v969_v35  ;;  %v4227_v44 = vadd.f32 %v701_v36, %v693_v20  ;;  %vm714_vm7 = vcmp.eq.f32.partialorder %v4203_v10, inf  ;;  %vm716_vm8 = vcmp.eq.f32.partialorder %v4203_v10, 0.0 }
 0x26a   : > { %v4229_v45 = vadd.f32 %v1001_v37, %v993_v21  ;;  %v4231_v46 = vadd.f32 %v700_v38, %v692_v22  ;;  %v3265_v48 = vpop.f32.mrb[18].mxu1  ;;  %v717_v55 = vand.u32 2147483648, %v4203_v10  ;;  %3486 = vrsqrt.f32 %v4223_v42 }
 0x26b   : > { %v4233_v47 = vadd.f32 %v1000_v39, %v992_v23  ;;  %v3297_v49 = vpop.f32.mrb[18].mxu0  ;;  %v4239_v51 = vpop.f32.mrb[19].mxu1  ;;  %vm1014_vm9 = vcmp.eq.f32.partialorder %v4205_v11, inf  ;;  %vm1016_vm10 = vcmp.eq.f32.partialorder %v4205_v11, 0.0  ;;  %3488 = vrsqrt.f32 %v4225_v43 }
 0x26c   : > { %v4241_v52 = vpop.f32.mrb[19].mxu0  ;;  %v1017_v60 = vand.u32 2147483648, %v4205_v11  ;;  %vm735_vm11 = vcmp.eq.f32.partialorder %v4219_v40, inf  ;;  %3490 = vrsqrt.f32 %v4227_v44  ;;  %vm737_vm12 = vcmp.eq.f32.partialorder %v4219_v40, 0.0 }
 0x26d   : > { %v3475_v54 = vpop.eup %3474  ;;  %v738_v0 = vand.u32 2147483648, %v4219_v40  ;;  %3492 = vrsqrt.f32 %v4229_v45  ;;  %vm1035_vm13 = vcmp.eq.f32.partialorder %v4221_v41, inf  ;;  %vm1037_vm14 = vcmp.eq.f32.partialorder %v4221_v41, 0.0 }
 0x26e   : > { %v3477_v56 = vpop.eup %3476  ;;  %v720_v57 = vmul.f32 %v3475_v54, %v4199_v8  ;;  %3494 = vrsqrt.f32 %v4231_v46  ;;  %vm728_vm15 = vcmp.eq.f32.partialorder %v4223_v42, inf  ;;  %vm730_vm0 = vcmp.eq.f32.partialorder %v4223_v42, 0.0 }
 0x26f   : > { %v3479_v58 = vpop.eup %3478  ;;  %v1020_v59 = vmul.f32 %v3477_v56, %v4201_v9  ;;  %vm1028_vm1 = vcmp.eq.f32.partialorder %v4225_v43, inf  ;;  %3496 = vrsqrt.f32 %v4233_v47  ;;  %vm1030_vm2 = vcmp.eq.f32.partialorder %v4225_v43, 0.0 }
 0x270   : > { %v3481_v61 = vpop.eup %3480  ;;  %v722_v62 = vsel %vm721_vm3, %v4199_v8, %v720_v57  ;;  %v713_v63 = vmul.f32 %v3479_v58, %v4203_v10  ;;  %v1038_v8 = vand.u32 2147483648, %v4221_v41  ;;  %v703_v17 = vmul.f32 %v3265_v48, %v3265_v48 }
 0x271   : > { %v725_v1 = vsel %vm723_vm4, %v724_v50, %v722_v62  ;;  %v1022_v2 = vsel %vm1021_vm5, %v4201_v9, %v1020_v59  ;;  %v1013_v3 = vmul.f32 %v3481_v61, %v4205_v11  ;;  %v3483_v13 = vpop.eup %3482  ;;  %vm749_vm3 = vcmp.eq.f32.partialorder %v4227_v44, inf }
 0x272   : > { %v1025_v4 = vsel %vm1023_vm6, %v1024_v53, %v1022_v2  ;;  %v715_v5 = vsel %vm714_vm7, %v4203_v10, %v713_v63  ;;  %v731_v10 = vand.u32 2147483648, %v4223_v42  ;;  %v3485_v15 = vpop.eup %3484  ;;  %v734_v16 = vmul.f32 %v3483_v13, %v4219_v40 }
 0x273   : > { %v718_v6 = vsel %vm716_vm8, %v717_v55, %v715_v5  ;;  %v1015_v7 = vsel %vm1014_vm9, %v4205_v11, %v1013_v3  ;;  %v1031_v11 = vand.u32 2147483648, %v4225_v43  ;;  %v1034_v19 = vmul.f32 %v3485_v15, %v4221_v41 }
 0x274   : > { %v768_v9 = vpack.c.bf16 %v725_v1, %v718_v6  ;;  %v1018_v12 = vsel %vm1016_vm10, %v1017_v60, %v1015_v7  ;;  %v3487_v18 = vpop.eup %3486  ;;  %vm751_vm4 = vcmp.eq.f32.partialorder %v4227_v44, 0.0  ;;  %v1003_v20 = vmul.f32 %v3297_v49, %v3297_v49 }
 0x275   : > { %v1068_v14 = vpack.c.bf16 %v1025_v4, %v1018_v12  ;;  %v3489_v21 = vpop.eup %3488  ;;  %v736_v22 = vsel %vm735_vm11, %v4219_v40, %v734_v16  ;;  %v727_v23 = vmul.f32 %v3487_v18, %v4223_v42  ;;  %v752_v28 = vand.u32 2147483648, %v4227_v44 }
 0x276   : > { %772 = vst [vmem:[#allocation2] sm:$0xff] %v768_v9  ;;  %v4305_v29 = vadd.f32 %v703_v17, %v4209_v24  ;;  %v3491_v30 = vpop.eup %3490  ;;  %v739_v31 = vsel %vm737_vm12, %v738_v0, %v736_v22  ;;  %v1036_v32 = vsel %vm1035_vm13, %v4221_v41, %v1034_v19  ;;  %v1027_v33 = vmul.f32 %v3489_v21, %v4225_v43 }
 0x277   : > { %1073 = vst [vmem:[#allocation2 + $0x8] sm:$0xff] %v1068_v14  ;;  %v4314_v34 = vadd.f32 %v1003_v20, %v4212_v25  ;;  %v1039_v35 = vsel %vm1037_vm14, %v1038_v8, %v1036_v32  ;;  %v729_v24 = vsel %vm728_vm15, %v4223_v42, %v727_v23  ;;  %v748_v36 = vmul.f32 %v3491_v30, %v4227_v44  ;;  %v3493_v37 = vpop.eup %3492 }
 0x278   : > { %3498 = vrsqrt.f32 %v4305_v29  ;;  %v732_v38 = vsel %vm730_vm0, %v731_v10, %v729_v24  ;;  %v1029_v25 = vsel %vm1028_vm1, %v4225_v43, %v1027_v33  ;;  %v702_v39 = vmul.f32 %v4239_v51, %v4239_v51  ;;  %v3495_v50 = vpop.eup %3494 }
 0x279   : > { %v1002_v40 = vmul.f32 %v4241_v52, %v4241_v52  ;;  %v769_v41 = vpack.c.bf16 %v739_v31, %v732_v38  ;;  %v1032_v48 = vsel %vm1030_vm2, %v1031_v11, %v1029_v25  ;;  %v750_v49 = vsel %vm749_vm3, %v4227_v44, %v748_v36  ;;  %v3497_v54 = vpop.eup %3496 }
 0x27a   : > { %v1048_v42 = vmul.f32 %v3493_v37, %v4229_v45  ;;  %v1069_v53 = vpack.c.bf16 %v1039_v35, %v1032_v48  ;;  %vm1049_vm5 = vcmp.eq.f32.partialorder %v4229_v45, inf  ;;  %vm1051_vm6 = vcmp.eq.f32.partialorder %v4229_v45, 0.0 }
 0x27b   : > { %3500 = vrsqrt.f32 %v4314_v34  ;;  %774 = vst [vmem:[#allocation2 + $0x10] sm:$0xff] %v769_v41  ;;  %v1052_v43 = vand.u32 2147483648, %v4229_v45  ;;  %v741_v52 = vmul.f32 %v3495_v50, %v4231_v46  ;;  %vm742_vm7 = vcmp.eq.f32.partialorder %v4231_v46, inf }
 0x27c   : > { %v1050_v51 = vsel %vm1049_vm5, %v4229_v45, %v1048_v42  ;;  %1075 = vst [vmem:[#allocation2 + $0x18] sm:$0xff] %v1069_v53  ;;  %v753_v55 = vsel %vm751_vm4, %v752_v28, %v750_v49  ;;  %v745_v56 = vand.u32 2147483648, %v4231_v46  ;;  %v710_v57 = vadd.f32 %v702_v39, %v4214_v26 }
 0x27d   : > { %v1010_v58 = vadd.f32 %v1002_v40, %v4216_v27  ;;  %v743_v59 = vsel %vm742_vm7, %v4231_v46, %v741_v52  ;;  %vm744_vm8 = vcmp.eq.f32.partialorder %v4231_v46, 0.0  ;;  %v1041_v60 = vmul.f32 %v3497_v54, %v4233_v47 }
 0x27e   : > { %vm1042_vm9 = vcmp.eq.f32.partialorder %v4233_v47, inf  ;;  %v1053_v61 = vsel %vm1051_vm6, %v1052_v43, %v1050_v51  ;;  %v746_v62 = vsel %vm744_vm8, %v745_v56, %v743_v59  ;;  %v1045_v44 = vand.u32 2147483648, %v4233_v47 }
 0x27f   : > { %3502 = vrsqrt.f32 %v710_v57  ;;  %v770_v63 = vpack.c.bf16 %v753_v55, %v746_v62  ;;  %v1043_v26 = vsel %vm1042_vm9, %v4233_v47, %v1041_v60  ;;  %vm1044_vm10 = vcmp.eq.f32.partialorder %v4233_v47, 0.0 }
 0x280   : > { %3504 = vrsqrt.f32 %v1010_v58  ;;  %v1046_v27 = vsel %vm1044_vm10, %v1045_v44, %v1043_v26  ;;  %vm763_vm11 = vcmp.eq.f32.partialorder %v4305_v29, inf  ;;  %vm1063_vm12 = vcmp.eq.f32.partialorder %v4314_v34, inf }
 0x281   : > { %776 = vst [vmem:[#allocation2 + $0x20] sm:$0xff] %v770_v63  ;;  %v1070_v46 = vpack.c.bf16 %v1053_v61, %v1046_v27  ;;  %vm765_vm13 = vcmp.eq.f32.partialorder %v4305_v29, 0.0  ;;  %v766_v47 = vand.u32 2147483648, %v4305_v29  ;;  %vm1065_vm14 = vcmp.eq.f32.partialorder %v4314_v34, 0.0 }
 0x282   : > { %v3499_v0 = vpop.eup %3498  ;;  %v1066_v7 = vand.u32 2147483648, %v4314_v34  ;;  %vm756_vm15 = vcmp.eq.f32.partialorder %v710_v57, inf  ;;  %vm758_vm0 = vcmp.eq.f32.partialorder %v710_v57, 0.0  ;;  %v759_v12 = vand.u32 2147483648, %v710_v57 }
 0x283   : > { %1077 = vst [vmem:[#allocation2 + $0x28] sm:$0xff] %v1070_v46  ;;  %v762_v1 = vmul.f32 %v3499_v0, %v4305_v29  ;;  %vm1056_vm1 = vcmp.eq.f32.partialorder %v1010_v58, inf  ;;  %v1059_v15 = vand.u32 2147483648, %v1010_v58  ;;  %vm1058_vm2 = vcmp.eq.f32.partialorder %v1010_v58, 0.0 }
 0x285   : > { %v3501_v2 = vpop.eup %3500  ;;  %v764_v3 = vsel %vm763_vm11, %v4305_v29, %v762_v1 }
 0x286   : > { %v1062_v45 = vmul.f32 %v3501_v2, %v4314_v34  ;;  %v767_v9 = vsel %vm765_vm13, %v766_v47, %v764_v3 }
 0x288   : > { %v1064_v5 = vsel %vm1063_vm12, %v4314_v34, %v1062_v45 }
 0x289   : > { %v3503_v4 = vpop.eup %3502  ;;  %v1067_v14 = vsel %vm1065_vm14, %v1066_v7, %v1064_v5 }
 0x28a   : > { %v3505_v6 = vpop.eup %3504  ;;  %v755_v8 = vmul.f32 %v3503_v4, %v710_v57 }
 0x28b   : > { %v1055_v13 = vmul.f32 %v3505_v6, %v1010_v58 }
 0x28c   : > { %v757_v10 = vsel %vm756_vm15, %v710_v57, %v755_v8 }
 0x28d   : > { %v760_v16 = vsel %vm758_vm0, %v759_v12, %v757_v10  ;;  %v1057_v11 = vsel %vm1056_vm1, %v1010_v58, %v1055_v13 }
 0x28e   : > { %v771_v17 = vpack.c.bf16 %v767_v9, %v760_v16  ;;  %v1060_v18 = vsel %vm1058_vm2, %v1059_v15, %v1057_v11 }
 0x28f   : > { %v1071_v19 = vpack.c.bf16 %v1067_v14, %v1060_v18 }
 0x290   : > { %778 = vst [vmem:[#allocation2 + $0x30] sm:$0xff] %v771_v17 }
 0x291   : > { %1079 = vst [vmem:[#allocation2 + $0x38] sm:$0xff] %v1071_v19 }
 0x292 PF: > { %v3506_v20 = vld [vmem:[%s4071_s8 + $0x40] sm:$0xff]   ;;  %v3510_v28 = vld [vmem:[%s4071_s8 + $0x48] sm:$0xff]   ;;  %v3514_v32 = vld [vmem:[%s4071_s8 + $0x50] sm:$0xff]   ;;  %s2965_s27 = sshll.u32 %s3910_s28, 4  ;;  %v1111_v54 = vlaneseq  ;;  %v3844_v62 = vmov 0   ;;  %p2957_p12 = scmp.ne.s32.totalorder %s3910_s28, 3 }
 0x293   : > { %v3507_v21 = vld [vmem:[%s4071_s8 + $0xc0] sm:$0xff]   ;;  %3019 = vmatprep.subr.bf16.mxu0 %v3506_v20  ;;  %v3511_v29 = vld [vmem:[%s4071_s8 + $0xc8] sm:$0xff]   ;;  %v3515_v33 = vld [vmem:[%s4071_s8 + $0xd0] sm:$0xff]   ;;  %s1090_s23 = scalar_lea.vmem [#allocation2], %s2965_s27  ;;  %v1102_v44 = vpack.i.b16 %v3844_v62, %v3844_v62  ;;  %v3845_v27 = vmov 1983009808  }
 0x294   : > { %v3508_v22 = vld [vmem:[%s4071_s8] sm:$0xff]   ;;  %3041 = vmatprep.subr.bf16.mxu1 %v3507_v21  ;;  %v3512_v30 = vld [vmem:[%s4071_s8 + $0x8] sm:$0xff]   ;;  %v3516_v34 = vld [vmem:[%s4071_s8 + $0x10] sm:$0xff]   ;;  %v1112_v59 = vshrl.u32 %v1111_v54, 7  ;;  %v1109_v0 = vunpack.c.l.s4 %v3845_v27  ;;  %v3846_v46 = vmov 1934713408  }
 0x295   : > { %v3509_v23 = vld [vmem:[%s4071_s8 + $0x80] sm:$0xff]   ;;  %3020 = vmatpush3.bf16.msra.mxu0 %v3508_v22  ;;  %v3513_v31 = vld [vmem:[%s4071_s8 + $0x88] sm:$0xff]   ;;  %v3517_v35 = vld [vmem:[%s4071_s8 + $0x90] sm:$0xff]   ;;  %v1124_v1 = vunpack.c.l.s4 %v3846_v46  ;;  %vm3848_vm3 = vmmov (!%p2957_p12), 0   ;;  %vm2656_vm5 = vcmask (!%p2957_p12), 33792  }
 0x296   : > { %3042 = vmatpush3.bf16.msra.mxu1 %v3509_v23  ;;  %3021 = vmatprep.subr.bf16.mxu0 %v3510_v28  ;;  %v3518_v24 = vld [vmem:[%s4071_s8 + $0x58] sm:$0xff]   ;;  %v3522_v25 = vld [vmem:[%s4071_s8 + $0x60] sm:$0xff]   ;;  %v3526_v48 = vld [vmem:[%s4071_s8 + $0x68] sm:$0xff]   ;;  %v1110_v4 = vunpack.c.0.s8 %v1109_v0 }
 0x297   : > { %3043 = vmatprep.subr.bf16.mxu1 %v3511_v29  ;;  %v3519_v36 = vld [vmem:[%s4071_s8 + $0xd8] sm:$0xff]   ;;  %v3523_v39 = vld [vmem:[%s4071_s8 + $0xe0] sm:$0xff]   ;;  %v3527_v49 = vld [vmem:[%s4071_s8 + $0xe8] sm:$0xff]   ;;  %v1125_v47 = vunpack.c.0.s8 %v1124_v1 }
 0x298   : > { %v3520_v37 = vld [vmem:[%s4071_s8 + $0x18] sm:$0xff]   ;;  %v3524_v40 = vld [vmem:[%s4071_s8 + $0x20] sm:$0xff]   ;;  %v3528_v42 = vld [vmem:[%s4071_s8 + $0x28] sm:$0xff]   ;;  %v1113_v7 = vsub.s32 %v1110_v4, %v1112_v59 }
 0x299   : > { %3022 = vmatpush3.bf16.msra.mxu0 %v3512_v30  ;;  %v3521_v38 = vld [vmem:[%s4071_s8 + $0x98] sm:$0xff]   ;;  %v3525_v41 = vld [vmem:[%s4071_s8 + $0xa0] sm:$0xff]   ;;  %v3529_v50 = vld [vmem:[%s4071_s8 + $0xa8] sm:$0xff]   ;;  %v4406_v8 = vsub.s32 %v1125_v47, %v1112_v59 }
 0x29a   : > { %3044 = vmatpush3.bf16.msra.mxu1 %v3513_v31  ;;  %3023 = vmatprep.subr.bf16.mxu0 %v3514_v32  ;;  %v3530_v53 = vld [vmem:[%s4071_s8 + $0x70] sm:$0xff]   ;;  %v3534_v55 = vld [vmem:[%s4071_s8 + $0x78] sm:$0xff]   ;;  %v3538_v45 = vld [vmem:[%s4071_s8 + $0x140] sm:$0xff]  }
 0x29b   : > { %3045 = vmatprep.subr.bf16.mxu1 %v3515_v33  ;;  %v3531_v51 = vld [vmem:[%s4071_s8 + $0xf0] sm:$0xff]   ;;  %v3535_v56 = vld [vmem:[%s4071_s8 + $0xf8] sm:$0xff]   ;;  %v3539_v5 = vld [vmem:[%s4071_s8 + $0x1c0] sm:$0xff]  }
 0x29c   : > { %v3532_v43 = vld [vmem:[%s4071_s8 + $0x30] sm:$0xff]   ;;  %v3536_v57 = vld [vmem:[%s4071_s8 + $0x38] sm:$0xff]   ;;  %v3540_v17 = vld [vmem:[%s4071_s8 + $0x100] sm:$0xff]  }
 0x29d   : > { %3024 = vmatpush3.bf16.msra.mxu0 %v3516_v34  ;;  %v3533_v52 = vld [vmem:[%s4071_s8 + $0xb0] sm:$0xff]   ;;  %v3537_v58 = vld [vmem:[%s4071_s8 + $0xb8] sm:$0xff]   ;;  %v3542_v18 = vld [vmem:[%s4071_s8 + $0x148] sm:$0xff]  }
 0x29e   : > { %3046 = vmatpush3.bf16.msra.mxu1 %v3517_v35  ;;  %3025 = vmatprep.subr.bf16.mxu0 %v3518_v24  ;;  %v1091_v60 = vld [vmem:[%s1090_s23] sm:$0xff]  ;;  %v1092_v61 = vld [vmem:[%s1090_s23 + $0x8] sm:$0xff]  ;;  %v3543_v30 = vld [vmem:[%s4071_s8 + $0x1c8] sm:$0xff]  }
 0x29f   : > { %3047 = vmatprep.subr.bf16.mxu1 %v3519_v36  ;;  %v1097_v63 = vshrl.u32 %v1091_v60, 16  ;;  %v1098_v26 = vshrl.u32 %v1092_v61, 16  ;;  %v1095_v2 = vpack.i.b16 %v1092_v61, %v1091_v60  ;;  %v3541_v28 = vld [vmem:[%s4071_s8 + $0x180] sm:$0xff]   ;;  %v3544_v34 = vld [vmem:[%s4071_s8 + $0x108] sm:$0xff]   ;;  %v3546_v24 = vld [vmem:[%s4071_s8 + $0x150] sm:$0xff]  }
 0x2a0   : > { %v3559_v54 = vld [vmem:[%s4071_s8 + $0x1e8] sm:$0xff]   ;;  %v3564_v59 = vld [vmem:[%s4071_s8 + $0x130] sm:$0xff]   ;;  %v3566_v61 = vld [vmem:[%s4071_s8 + $0x178] sm:$0xff]  }
 0x2a1   : > { %3026 = vmatpush3.bf16.msra.mxu0 %v3520_v37  ;;  %v1099_v3 = vpack.i.b16 %v1098_v26, %v1097_v63  ;;  %v1107_v6 = vcombine.high %v1095_v2, %v1102_v44  ;;  %v4408_v13 = vrot.slane %v1095_v2, %v1113_v7  ;;  %v3567_v63 = vld [vmem:[%s4071_s8 + $0x1f8] sm:$0xff]   ;;  %v3570_v0 = vld [vmem:[%s4071_s8 + $0x240] sm:$0xff]   ;;  %v3574_v4 = vld [vmem:[%s4071_s8 + $0x248] sm:$0xff]  }
 0x2a2   : > { %3048 = vmatpush3.bf16.msra.mxu1 %v3521_v38  ;;  %3027 = vmatprep.subr.bf16.mxu0 %v3522_v25  ;;  %v3545_v38 = vld [vmem:[%s4071_s8 + $0x188] sm:$0xff]   ;;  %v3547_v25 = vld [vmem:[%s4071_s8 + $0x1d0] sm:$0xff]   ;;  %v3568_v26 = vld [vmem:[%s4071_s8 + $0x138] sm:$0xff]  }
 0x2a3   : > { %3049 = vmatprep.subr.bf16.mxu1 %v3523_v39  ;;  %v1156_v9 = vcombine.high %v1099_v3, %v1102_v44  ;;  %v1163_v12 = vrot.slane %v1099_v3, %v1113_v7  ;;  %v1121_v14 = vrot.slane %v1107_v6, %v1113_v7  ;;  %v1129_v11 = vrot.slane %v4408_v13, %v4406_v8  ;;  %v3548_v39 = vld [vmem:[%s4071_s8 + $0x110] sm:$0xff]   ;;  %v3569_v46 = vld [vmem:[%s4071_s8 + $0x1b8] sm:$0xff]   ;;  %v3571_v2 = vld [vmem:[%s4071_s8 + $0x2c0] sm:$0xff]  }
 0x2a4   : > { %v1122_v60 = vcombine.high %v4408_v13, %v3844_v62  ;;  %v3565_v44 = vld [vmem:[%s4071_s8 + $0x1b0] sm:$0xff]   ;;  %v3573_v47 = vld [vmem:[%s4071_s8 + $0x280] sm:$0xff]   ;;  %v3575_v6 = vld [vmem:[%s4071_s8 + $0x2c8] sm:$0xff]  }
 0x2a5   : > { %3028 = vmatpush3.bf16.msra.mxu0 %v3524_v40  ;;  %v4410_v10 = vrot.slane %v1156_v9, %v1113_v7  ;;  %v1171_v15 = vcombine.high %v1163_v12, %v3844_v62  ;;  %v1178_v16 = vrot.slane %v1163_v12, %v4406_v8  ;;  %v4419_v19 = vrot.slane %v1121_v14, %v4406_v8  ;;  %v3550_v40 = vld [vmem:[%s4071_s8 + $0x158] sm:$0xff]   ;;  %v3576_v7 = vld [vmem:[%s4071_s8 + $0x208] sm:$0xff]   ;;  %v3580_v12 = vld [vmem:[%s4071_s8 + $0x210] sm:$0xff]  }
 0x2a6   : > { %3050 = vmatpush3.bf16.msra.mxu1 %v3525_v41  ;;  %3029 = vmatprep.subr.bf16.mxu0 %v3526_v48  ;;  %v1137_v21 = vcombine.high %v1121_v14, %v3844_v62  ;;  %v1152_v23 = vcombine.high %v1129_v11, %v3844_v62  ;;  %v3549_v41 = vld [vmem:[%s4071_s8 + $0x190] sm:$0xff]   ;;  %v3551_v48 = vld [vmem:[%s4071_s8 + $0x1d8] sm:$0xff]   ;;  %v1136_v27 = vrot.slane %v1122_v60, %v4406_v8  ;;  %v3577_v9 = vld [vmem:[%s4071_s8 + $0x288] sm:$0xff]  }
 0x2a7   : > { %3051 = vmatprep.subr.bf16.mxu1 %v3527_v49  ;;  %v1186_v20 = vcombine.high %v4410_v10, %v3844_v62  ;;  %2262 = vmatprep.mubr.bf16.mxu0 %v1178_v16  ;;  %v1201_v22 = vcombine.high %v1178_v16, %v3844_v62  ;;  %v1185_v29 = vrot.slane %v1171_v15, %v4406_v8  ;;  %v3552_v49 = vld [vmem:[%s4071_s8 + $0x118] sm:$0xff]   ;;  %v3581_v14 = vld [vmem:[%s4071_s8 + $0x290] sm:$0xff]   ;;  %v3586_v16 = vld [vmem:[%s4071_s8 + $0x260] sm:$0xff]  }
 0x2a8   : > { %v4431_v31 = vcombine.high %v4419_v19, %v3844_v62  ;;  %v4437_v33 = vrot.slane %v1137_v21, %v4406_v8  ;;  %v1193_v1 = vrot.slane %v4410_v10, %v4406_v8  ;;  %v1153_v3 = vcombine.high %v1136_v27, %v3844_v62  ;;  %v3582_v13 = vld [vmem:[%s4071_s8 + $0x258] sm:$0xff]   ;;  %v3589_v21 = vld [vmem:[%s4071_s8 + $0x2a0] sm:$0xff]  }
 0x2a9   : > { %3030 = vmatpush3.bf16.msra.mxu0 %v3528_v42  ;;  %v4434_v32 = vrot.slane %v1186_v20, %v4406_v8  ;;  %2302 = vmatprep.mubr.bf16.mxu1 %v1201_v22  ;;  %v1202_v35 = vcombine.high %v1185_v29, %v3844_v62  ;;  %v3554_v42 = vld [vmem:[%s4071_s8 + $0x160] sm:$0xff]   ;;  %v3578_v8 = vld [vmem:[%s4071_s8 + $0x250] sm:$0xff]   ;;  %v3583_v10 = vld [vmem:[%s4071_s8 + $0x2d8] sm:$0xff]  }
 0x2aa   : > { %3052 = vmatpush3.bf16.msra.mxu1 %v3529_v50  ;;  %3031 = vmatprep.subr.bf16.mxu0 %v3530_v53  ;;  %v4448_v37 = vcombine.high %v4437_v33, %v3844_v62  ;;  %v3553_v50 = vld [vmem:[%s4071_s8 + $0x198] sm:$0xff]   ;;  %v3555_v53 = vld [vmem:[%s4071_s8 + $0x1e0] sm:$0xff]   ;;  %v3590_v20 = vld [vmem:[%s4071_s8 + $0x268] sm:$0xff]  }
 0x2ab   : > { %3053 = vmatprep.subr.bf16.mxu1 %v3531_v51  ;;  %v4444_v36 = vcombine.high %v4434_v32, %v3844_v62  ;;  %v3556_v51 = vld [vmem:[%s4071_s8 + $0x120] sm:$0xff]   ;;  %v3584_v15 = vld [vmem:[%s4071_s8 + $0x218] sm:$0xff]   ;;  %v3591_v22 = vld [vmem:[%s4071_s8 + $0x2e8] sm:$0xff]  }
 0x2ac   : > { %v3621_v60 = vld [vmem:[%s4071_s8 + $0x3a0] sm:$0xff]  }
 0x2ad   : > { %3032 = vmatpush3.bf16.msra.mxu0 %v3532_v43  ;;  %v3558_v43 = vld [vmem:[%s4071_s8 + $0x168] sm:$0xff]  }
 0x2ae   : > { %3054 = vmatpush3.bf16.msra.mxu1 %v3533_v52  ;;  %3033 = vmatprep.subr.bf16.mxu0 %v3534_v55  ;;  %v3557_v52 = vld [vmem:[%s4071_s8 + $0x1a0] sm:$0xff]   ;;  %v3560_v55 = vld [vmem:[%s4071_s8 + $0x128] sm:$0xff]  }
 0x2af   : > { %3055 = vmatprep.subr.bf16.mxu1 %v3535_v56  ;;  %v3562_v56 = vld [vmem:[%s4071_s8 + $0x170] sm:$0xff]  }
 0x2b1   : > { %3034 = vmatpush3.bf16.msra.mxu0 %v3536_v57  ;;  %v3561_v57 = vld [vmem:[%s4071_s8 + $0x1a8] sm:$0xff]  }
 0x2b2   : > { %3056 = vmatpush3.bf16.msra.mxu1 %v3537_v58  ;;  %3063 = vmatprep.subr.bf16.mxu0 %v3538_v45  ;;  %v3563_v58 = vld [vmem:[%s4071_s8 + $0x1f0] sm:$0xff]   ;;  %v3572_v45 = vld [vmem:[%s4071_s8 + $0x200] sm:$0xff]  }
 0x2b3   : > { %3085 = vmatprep.subr.bf16.mxu1 %v3539_v5  ;;  %v1203_v5 = vcombine.high %v1193_v1, %v3844_v62  ;;  %v3579_v62 = vld [vmem:[%s4071_s8 + $0x2d0] sm:$0xff]  }
 0x2b4   : > { %2263 = vmatmul.mubr.bf16.vlgmr.msra.gmra.mrb[0].mxu0 %v1129_v11  ;;  %v3585_v11 = vld [vmem:[%s4071_s8 + $0x298] sm:$0xff]  }
 0x2b5   : > { %3064 = vmatpush3.bf16.msra.mxu0 %v3540_v17  ;;  %2303 = vmatmul.mubr.bf16.vlgmr.msra.gmra.mrb[0].mxu1 %v1152_v23  ;;  %v3587_v17 = vld [vmem:[%s4071_s8 + $0x2e0] sm:$0xff]   ;;  %v3592_v23 = vld [vmem:[%s4071_s8 + $0x228] sm:$0xff]  }
 0x2b6   : > { %3065 = vmatprep.subr.bf16.mxu0 %v3542_v18  ;;  %3086 = vmatpush3.bf16.msra.mxu1 %v3541_v28  ;;  %v3588_v18 = vld [vmem:[%s4071_s8 + $0x220] sm:$0xff]   ;;  %v3594_v28 = vld [vmem:[%s4071_s8 + $0x270] sm:$0xff]  }
 0x2b7   : > { %2342 = vmatprep.mubr.bf16.mxu0 %v1185_v29  ;;  %3087 = vmatprep.subr.bf16.mxu1 %v3543_v30  ;;  %v3593_v29 = vld [vmem:[%s4071_s8 + $0x2a8] sm:$0xff]   ;;  %v3595_v30 = vld [vmem:[%s4071_s8 + $0x2f0] sm:$0xff]  }
 0x2b8   : > { %2382 = vmatprep.mubr.bf16.mxu1 %v1202_v35  ;;  %v3598_v35 = vld [vmem:[%s4071_s8 + $0x278] sm:$0xff]  }
 0x2b9   : > { %3066 = vmatpush3.bf16.msra.mxu0 %v3544_v34  ;;  %v3596_v34 = vld [vmem:[%s4071_s8 + $0x230] sm:$0xff]  }
 0x2ba   : > { %3067 = vmatprep.subr.bf16.mxu0 %v3546_v24  ;;  %3088 = vmatpush3.bf16.msra.mxu1 %v3545_v38  ;;  %v3597_v24 = vld [vmem:[%s4071_s8 + $0x2b0] sm:$0xff]   ;;  %v3599_v38 = vld [vmem:[%s4071_s8 + $0x2f8] sm:$0xff]  }
 0x2bb   : > { %3089 = vmatprep.subr.bf16.mxu1 %v3547_v25  ;;  %v3600_v25 = vld [vmem:[%s4071_s8 + $0x238] sm:$0xff]  }
 0x2bd   : > { %3068 = vmatpush3.bf16.msra.mxu0 %v3548_v39  ;;  %v3602_v39 = vld [vmem:[%s4071_s8 + $0x340] sm:$0xff]  }
 0x2be   : > { %3069 = vmatprep.subr.bf16.mxu0 %v3550_v40  ;;  %3090 = vmatpush3.bf16.msra.mxu1 %v3549_v41  ;;  %v3601_v40 = vld [vmem:[%s4071_s8 + $0x2b8] sm:$0xff]   ;;  %v3603_v41 = vld [vmem:[%s4071_s8 + $0x3c0] sm:$0xff]  }
 0x2bf   : > { %3091 = vmatprep.subr.bf16.mxu1 %v3551_v48  ;;  %v3604_v48 = vld [vmem:[%s4071_s8 + $0x300] sm:$0xff]  }
 0x2c1   : > { %3070 = vmatpush3.bf16.msra.mxu0 %v3552_v49  ;;  %v3606_v49 = vld [vmem:[%s4071_s8 + $0x348] sm:$0xff]  }
 0x2c2   : > { %3071 = vmatprep.subr.bf16.mxu0 %v3554_v42  ;;  %3092 = vmatpush3.bf16.msra.mxu1 %v3553_v50  ;;  %v3605_v42 = vld [vmem:[%s4071_s8 + $0x380] sm:$0xff]   ;;  %v3607_v50 = vld [vmem:[%s4071_s8 + $0x3c8] sm:$0xff]  }
 0x2c3   : > { %3093 = vmatprep.subr.bf16.mxu1 %v3555_v53  ;;  %v3608_v53 = vld [vmem:[%s4071_s8 + $0x308] sm:$0xff]  }
 0x2c5   : > { %3072 = vmatpush3.bf16.msra.mxu0 %v3556_v51  ;;  %v3610_v51 = vld [vmem:[%s4071_s8 + $0x350] sm:$0xff]  }
 0x2c6   : > { %3073 = vmatprep.subr.bf16.mxu0 %v3558_v43  ;;  %3094 = vmatpush3.bf16.msra.mxu1 %v3557_v52  ;;  %v3609_v43 = vld [vmem:[%s4071_s8 + $0x388] sm:$0xff]   ;;  %v3612_v52 = vld [vmem:[%s4071_s8 + $0x310] sm:$0xff]  }
 0x2c7   : > { %3095 = vmatprep.subr.bf16.mxu1 %v3559_v54  ;;  %v3615_v54 = vld [vmem:[%s4071_s8 + $0x3d8] sm:$0xff]  }
 0x2c9   : > { %3074 = vmatpush3.bf16.msra.mxu0 %v3560_v55  ;;  %v3616_v55 = vld [vmem:[%s4071_s8 + $0x318] sm:$0xff]  }
 0x2ca   : > { %3075 = vmatprep.subr.bf16.mxu0 %v3562_v56  ;;  %3096 = vmatpush3.bf16.msra.mxu1 %v3561_v57  ;;  %v3617_v56 = vld [vmem:[%s4071_s8 + $0x398] sm:$0xff]   ;;  %v3619_v57 = vld [vmem:[%s4071_s8 + $0x3e0] sm:$0xff]  }
 0x2cb   : > { %3097 = vmatprep.subr.bf16.mxu1 %v3563_v58  ;;  %v3620_v58 = vld [vmem:[%s4071_s8 + $0x320] sm:$0xff]  }
 0x2cd   : > { %3076 = vmatpush3.bf16.msra.mxu0 %v3564_v59  ;;  %v3622_v59 = vld [vmem:[%s4071_s8 + $0x368] sm:$0xff]  }
 0x2ce   : > { %3077 = vmatprep.subr.bf16.mxu0 %v3566_v61  ;;  %3098 = vmatpush3.bf16.msra.mxu1 %v3565_v44  ;;  %v3623_v61 = vld [vmem:[%s4071_s8 + $0x3e8] sm:$0xff]  }
 0x2cf   : > { %3099 = vmatprep.subr.bf16.mxu1 %v3567_v63  ;;  %v3624_v44 = vld [vmem:[%s4071_s8 + $0x328] sm:$0xff]   ;;  %v3626_v63 = vld [vmem:[%s4071_s8 + $0x370] sm:$0xff]  }
 0x2d1   : > { %3078 = vmatpush3.bf16.msra.mxu0 %v3568_v26  ;;  %v3625_v26 = vld [vmem:[%s4071_s8 + $0x3a8] sm:$0xff]  }
 0x2d2   : > { %3107 = vmatprep.subr.bf16.mxu0 %v3570_v0  ;;  %3100 = vmatpush3.bf16.msra.mxu1 %v3569_v46  ;;  %v3628_v0 = vld [vmem:[%s4071_s8 + $0x330] sm:$0xff]   ;;  %v3630_v46 = vld [vmem:[%s4071_s8 + $0x378] sm:$0xff]  }
 0x2d3   : > { %3129 = vmatprep.subr.bf16.mxu1 %v3571_v2  ;;  %v3631_v2 = vld [vmem:[%s4071_s8 + $0x3f8] sm:$0xff]  }
 0x2d4   : > { %2343 = vmatmul.mubr.bf16.vlgmr.msra.gmra.mrb[4].mxu0 %v1136_v27  ;;  %v3627_v27 = vld [vmem:[%s4071_s8 + $0x3f0] sm:$0xff]  }
 0x2d5   : > { %3108 = vmatpush3.bf16.msra.mxu0 %v3572_v45  ;;  %2422 = vmatprep.mubr.bf16.mxu0 %v1193_v1  ;;  %v3629_v1 = vld [vmem:[%s4071_s8 + $0x3b0] sm:$0xff]   ;;  %v3632_v45 = vld [vmem:[%s4071_s8 + $0x338] sm:$0xff]  }
 0x2d6   : > { %2383 = vmatmul.mubr.bf16.vlgmr.msra.gmra.mrb[4].mxu1 %v1153_v3  ;;  %3109 = vmatprep.subr.bf16.mxu0 %v3574_v4  ;;  %v3633_v3 = vld [vmem:[%s4071_s8 + $0x3b8] sm:$0xff]  }
 0x2d7   : > { %3130 = vmatpush3.bf16.msra.mxu1 %v3573_v47  ;;  %2462 = vmatprep.mubr.bf16.mxu1 %v1203_v5 }
 0x2d8   : > { %3131 = vmatprep.subr.bf16.mxu1 %v3575_v6 }
 0x2d9   : > { %3110 = vmatpush3.bf16.msra.mxu0 %v3576_v7 }
 0x2da   : > { %3111 = vmatprep.subr.bf16.mxu0 %v3578_v8 }
 0x2db   : > { %3132 = vmatpush3.bf16.msra.mxu1 %v3577_v9 }
 0x2dc   : > { %3133 = vmatprep.subr.bf16.mxu1 %v3579_v62 }
 0x2dd   : > { %3112 = vmatpush3.bf16.msra.mxu0 %v3580_v12 }
 0x2de   : > { %3113 = vmatprep.subr.bf16.mxu0 %v3582_v13 }
 0x2df   : > { %3134 = vmatpush3.bf16.msra.mxu1 %v3581_v14 }
 0x2e0   : > { %3135 = vmatprep.subr.bf16.mxu1 %v3583_v10 }
 0x2e1   : > { %3114 = vmatpush3.bf16.msra.mxu0 %v3584_v15 }
 0x2e2   : > { %3115 = vmatprep.subr.bf16.mxu0 %v3586_v16 }
 0x2e3   : > { %3136 = vmatpush3.bf16.msra.mxu1 %v3585_v11 }
 0x2e4   : > { %3137 = vmatprep.subr.bf16.mxu1 %v3587_v17 }
 0x2e5   : > { %3116 = vmatpush3.bf16.msra.mxu0 %v3588_v18 }
 0x2e6   : > { %3117 = vmatprep.subr.bf16.mxu0 %v3590_v20 }
 0x2e7   : > { %3138 = vmatpush3.bf16.msra.mxu1 %v3589_v21 }
 0x2e8   : > { %3139 = vmatprep.subr.bf16.mxu1 %v3591_v22 }
 0x2e9   : > { %3118 = vmatpush3.bf16.msra.mxu0 %v3592_v23 }
 0x2ea   : > { %3119 = vmatprep.subr.bf16.mxu0 %v3594_v28 }
 0x2eb   : > { %3140 = vmatpush3.bf16.msra.mxu1 %v3593_v29 }
 0x2ec   : > { %3141 = vmatprep.subr.bf16.mxu1 %v3595_v30 }
 0x2ed   : > { %3120 = vmatpush3.bf16.msra.mxu0 %v3596_v34 }
 0x2ee   : > { %3121 = vmatprep.subr.bf16.mxu0 %v3598_v35 }
 0x2ef   : > { %3142 = vmatpush3.bf16.msra.mxu1 %v3597_v24 }
 0x2f0   : > { %3143 = vmatprep.subr.bf16.mxu1 %v3599_v38 }
 0x2f1   : > { %3122 = vmatpush3.bf16.msra.mxu0 %v3600_v25 }
 0x2f2   : > { %3151 = vmatprep.subr.bf16.mxu0 %v3602_v39 }
 0x2f3   : > { %3144 = vmatpush3.bf16.msra.mxu1 %v3601_v40 }
 0x2f4   : > { %2423 = vmatmul.mubr.bf16.vlgmr.msra.gmra.mrb[8].mxu0 %v4419_v19  ;;  %3173 = vmatprep.subr.bf16.mxu1 %v3603_v41  ;;  %v3611_v19 = vld [vmem:[%s4071_s8 + $0x3d0] sm:$0xff]  }
 0x2f5   : > { %3152 = vmatpush3.bf16.msra.mxu0 %v3604_v48  ;;  %2502 = vmatprep.mubr.bf16.mxu0 %v4434_v32  ;;  %v3614_v32 = vld [vmem:[%s4071_s8 + $0x358] sm:$0xff]  }
 0x2f6   : > { %2463 = vmatmul.mubr.bf16.vlgmr.msra.gmra.mrb[8].mxu1 %v4431_v31  ;;  %3153 = vmatprep.subr.bf16.mxu0 %v3606_v49  ;;  %v3613_v31 = vld [vmem:[%s4071_s8 + $0x390] sm:$0xff]  }
 0x2f7   : > { %3174 = vmatpush3.bf16.msra.mxu1 %v3605_v42  ;;  %2542 = vmatprep.mubr.bf16.mxu1 %v4444_v36  ;;  %v3618_v36 = vld [vmem:[%s4071_s8 + $0x360] sm:$0xff]  }
 0x2f8   : > { %3175 = vmatprep.subr.bf16.mxu1 %v3607_v50 }
 0x2f9   : > { %3154 = vmatpush3.bf16.msra.mxu0 %v3608_v53 }
 0x2fa   : > { %3155 = vmatprep.subr.bf16.mxu0 %v3610_v51 }
 0x2fb   : > { %3176 = vmatpush3.bf16.msra.mxu1 %v3609_v43 }
 0x2fc   : > { %3177 = vmatprep.subr.bf16.mxu1 %v3611_v19 }
 0x2fd   : > { %3156 = vmatpush3.bf16.msra.mxu0 %v3612_v52 }
 0x2fe   : > { %3157 = vmatprep.subr.bf16.mxu0 %v3614_v32 }
 0x2ff   : > { %3178 = vmatpush3.bf16.msra.mxu1 %v3613_v31 }
 0x300   : > { %3179 = vmatprep.subr.bf16.mxu1 %v3615_v54  ;;  %v1205_v54 = vld [vmem:[#allocation3] sm:$0x3] }
 0x301   : > { %3158 = vmatpush3.bf16.msra.mxu0 %v3616_v55 }
 0x302   : > { %3159 = vmatprep.subr.bf16.mxu0 %v3618_v36 }
 0x303   : > { %3180 = vmatpush3.bf16.msra.mxu1 %v3617_v56 }
 0x304   : > { %3181 = vmatprep.subr.bf16.mxu1 %v3619_v57  ;;  %v2563_v57 = vld [vmem:[%s4645_s5] sm:$0xff] (!%p2957_p12) }
 0x305   : > { %3160 = vmatpush3.bf16.msra.mxu0 %v3620_v58  ;;  %v2564_v58 = vld [vmem:[%s4645_s5 + $0x8] sm:$0xff] (!%p2957_p12) }
 0x306   : > { %3161 = vmatprep.subr.bf16.mxu0 %v3622_v59  ;;  %v2565_v59 = vld [vmem:[%s4645_s5 + $0x10] sm:$0xff] (!%p2957_p12) }
 0x307   : > { %3182 = vmatpush3.bf16.msra.mxu1 %v3621_v60  ;;  %v3847_v60 = vmov (!%p2957_p12), 0.0|0.0  }
 0x308   : > { %3183 = vmatprep.subr.bf16.mxu1 %v3623_v61  ;;  %v3358_v61 = vpack.c.bf16 (!%p2957_p12), %v2564_v58, %v2563_v57 }
 0x309   : > { %3162 = vmatpush3.bf16.msra.mxu0 %v3624_v44  ;;  %v2566_v44 = vld [vmem:[%s4645_s5 + $0x18] sm:$0xff] (!%p2957_p12) }
 0x30a   : > { %3163 = vmatprep.subr.bf16.mxu0 %v3626_v63  ;;  %v3849_v63 = vmov (!%p2957_p12), 0.0  }
 0x30b   : > { %3184 = vmatpush3.bf16.msra.mxu1 %v3625_v26  ;;  %v3361_v26 = vpack.c.bf16 (!%p2957_p12), %v2566_v44, %v2565_v59 }
 0x30c   : > { %3185 = vmatprep.subr.bf16.mxu1 %v3627_v27  ;;  %v2567_v27 = vld [vmem:[%s4645_s5 + $0x20] sm:$0xff] (!%p2957_p12) }
 0x30d   : > { %3164 = vmatpush3.bf16.msra.mxu0 %v3628_v0  ;;  %v2568_v0 = vld [vmem:[%s4645_s5 + $0x28] sm:$0xff] (!%p2957_p12) }
 0x30e   : > { %3165 = vmatprep.subr.bf16.mxu0 %v3630_v46 }
 0x30f   : > { %3186 = vmatpush3.bf16.msra.mxu1 %v3629_v1 }
 0x310   : > { %3187 = vmatprep.subr.bf16.mxu1 %v3631_v2  ;;  %v3364_v2 = vpack.c.bf16 (!%p2957_p12), %v2568_v0, %v2567_v27 }
 0x311   : > { %3166 = vmatpush3.bf16.msra.mxu0 %v3632_v45  ;;  %v2569_v45 = vld [vmem:[%s4645_s5 + $0x30] sm:$0xff] (!%p2957_p12) }
 0x312   : > { %3357 = vmatprep.subr.bf16.mxu0 (!%p2957_p12), %v3847_v60 }
 0x313   : > { %3188 = vmatpush3.bf16.msra.mxu1 %v3633_v3  ;;  %v2570_v3 = vld [vmem:[%s4645_s5 + $0x38] sm:$0xff] (!%p2957_p12) }
 0x314   : > { %2503 = vmatmul.mubr.bf16.vlgmr.msra.gmra.mrb[12].mxu0 %v4437_v33 }
 0x315   : > { %3330 = vmatprep.mubr.msk.f32.mxu0 (!%p2957_p12), %vm3848_vm3, %v3849_v63  ;;  %3359 = vmatpush3.bf16.msra.mxu0 (!%p2957_p12), %v3358_v61 }
 0x316   : > { %2543 = vmatmul.mubr.bf16.vlgmr.msra.gmra.mrb[12].mxu1 %v4448_v37  ;;  %3360 = vmatprep.subr.bf16.mxu0 (!%p2957_p12), %v3847_v60 }
 0x319   : > { %3362 = vmatpush3.bf16.msra.mxu0 (!%p2957_p12), %v3361_v26 }
 0x31a   : > { %3363 = vmatprep.subr.bf16.mxu0 (!%p2957_p12), %v3847_v60 }
 0x31d   : > { %3365 = vmatpush3.bf16.msra.mxu0 (!%p2957_p12), %v3364_v2 }
 0x31e   : > { %3366 = vmatprep.subr.bf16.mxu0 (!%p2957_p12), %v3847_v60 }
 0x387   : > { %v3035_v4 = vpop.f32.mrb[0].mxu0 }
 0x388   : > { %v3036_v47 = vpop.f32.mrb[1].mxu0  ;;  %v3057_v5 = vpop.f32.mrb[0].mxu1 }
 0x389   : > { %v3037_v6 = vadd.f32 %v3036_v47, %v3035_v4  ;;  %v3038_v7 = vpop.f32.mrb[2].mxu0  ;;  %v3058_v8 = vpop.f32.mrb[1].mxu1  ;;  %v3367_v47 = vpack.c.bf16 (!%p2957_p12), %v2570_v3, %v2569_v45 }
 0x38a   : > { %v3039_v9 = vpop.f32.mrb[3].mxu0  ;;  %v3059_v62 = vadd.f32 %v3058_v8, %v3057_v5  ;;  %v3060_v12 = vpop.f32.mrb[2].mxu1  ;;  %v2571_v5 = vld [vmem:[%s4645_s5 + $0x40] sm:$0xff] (!%p2957_p12)  ;;  %v2573_v8 = vld [vmem:[%s4645_s5 + $0x50] sm:$0xff] (!%p2957_p12) }
 0x38b   : > { %v3061_v13 = vpop.f32.mrb[3].mxu1  ;;  %3368 = vmatpush3.bf16.msra.mxu0 (!%p2957_p12), %v3367_v47  ;;  %v2574_v9 = vld [vmem:[%s4645_s5 + $0x58] sm:$0xff] (!%p2957_p12)  ;;  %v2575_v12 = vld [vmem:[%s4645_s5 + $0x60] sm:$0xff] (!%p2957_p12) }
 0x38c   : > { %v2305_v14 = vadd.f32 %v3059_v62, %v3037_v6  ;;  %v2572_v6 = vld [vmem:[%s4645_s5 + $0x48] sm:$0xff] (!%p2957_p12)  ;;  %3369 = vmatprep.subr.bf16.mxu0 (!%p2957_p12), %v3847_v60  ;;  %v3373_v62 = vpack.c.bf16 (!%p2957_p12), %v2574_v9, %v2573_v8 }
 0x38d   : > { %v3370_v7 = vpack.c.bf16 (!%p2957_p12), %v2572_v6, %v2571_v5  ;;  %v2576_v13 = vld [vmem:[%s4645_s5 + $0x68] sm:$0xff] (!%p2957_p12) }
 0x38f   : > { %3371 = vmatpush3.bf16.msra.mxu0 (!%p2957_p12), %v3370_v7 }
 0x390   : > { %3372 = vmatprep.subr.bf16.mxu0 (!%p2957_p12), %v3847_v60 }
 0x393   : > { %3374 = vmatpush3.bf16.msra.mxu0 (!%p2957_p12), %v3373_v62 }
 0x394   : > { %3375 = vmatprep.subr.bf16.mxu0 (!%p2957_p12), %v3847_v60 }
 0x3a7   : > { %v3079_v10 = vpop.f32.mrb[4].mxu0 }
 0x3a8   : > { %v3080_v15 = vpop.f32.mrb[5].mxu0 }
 0x3a9   : > { %v3101_v16 = vpop.f32.mrb[4].mxu1  ;;  %v3081_v11 = vadd.f32 %v3080_v15, %v3079_v10  ;;  %v3082_v17 = vpop.f32.mrb[6].mxu0  ;;  %v2577_v15 = vld [vmem:[%s4645_s5 + $0x70] sm:$0xff] (!%p2957_p12) }
 0x3aa   : > { %v3102_v18 = vpop.f32.mrb[5].mxu1  ;;  %v3083_v33 = vpop.f32.mrb[7].mxu0 }
 0x3ab   : > { %v2345_v20 = vadd.f32 %v3081_v11, %v2305_v14  ;;  %v3103_v37 = vadd.f32 %v3102_v18, %v3101_v16  ;;  %v3104_v21 = vpop.f32.mrb[6].mxu1  ;;  %v3376_v14 = vpack.c.bf16 (!%p2957_p12), %v2576_v13, %v2575_v12  ;;  %v2578_v16 = vld [vmem:[%s4645_s5 + $0x78] sm:$0xff] (!%p2957_p12)  ;;  %v2959_v33 = vld [vmem:[#allocation10] ss:$0 sm:$0xff] (!%p2957_p12) }
 0x3ac   : > { %v3105_v22 = vpop.f32.mrb[7].mxu1  ;;  %v3379_v11 = vpack.c.bf16 (!%p2957_p12), %v2578_v16, %v2577_v15 }
 0x3ad   : > { %v2385_v23 = vadd.f32 %v3103_v37, %v2345_v20  ;;  %3377 = vmatpush3.bf16.msra.mxu0 (!%p2957_p12), %v3376_v14 }
 0x3ae   : > { %3378 = vmatprep.subr.bf16.mxu0 (!%p2957_p12), %v3847_v60 }
 0x3b1   : > { %3380 = vmatpush3.bf16.msra.mxu0 (!%p2957_p12), %v3379_v11 }
 0x3c7   : > { %v3123_v28 = vpop.f32.mrb[8].mxu0 }
 0x3c8   : > { %v3124_v29 = vpop.f32.mrb[9].mxu0 }
 0x3c9   : > { %v3145_v30 = vpop.f32.mrb[8].mxu1  ;;  %v3125_v34 = vadd.f32 %v3124_v29, %v3123_v28  ;;  %v3126_v35 = vpop.f32.mrb[10].mxu0 }
 0x3ca   : > { %v3146_v24 = vpop.f32.mrb[9].mxu1  ;;  %v3127_v38 = vpop.f32.mrb[11].mxu0 }
 0x3cb   : > { %v2425_v25 = vadd.f32 %v3125_v34, %v2385_v23  ;;  %v3147_v39 = vadd.f32 %v3146_v24, %v3145_v30  ;;  %v3148_v40 = vpop.f32.mrb[10].mxu1 }
 0x3cc   : > { %v3149_v41 = vpop.f32.mrb[11].mxu1 }
 0x3cd   : > { %v2465_v48 = vadd.f32 %v3147_v39, %v2425_v25 }
 0x3e7   : > { %v3167_v49 = vpop.f32.mrb[12].mxu0 }
 0x3e8   : > { %v3168_v42 = vpop.f32.mrb[13].mxu0 }
 0x3e9   : > { %v3189_v50 = vpop.f32.mrb[12].mxu1  ;;  %v3169_v53 = vadd.f32 %v3168_v42, %v3167_v49  ;;  %v3170_v51 = vpop.f32.mrb[14].mxu0 }
 0x3ea   : > { %v3190_v43 = vpop.f32.mrb[13].mxu1  ;;  %v3171_v19 = vpop.f32.mrb[15].mxu0 }
 0x3eb   : > { %v2505_v52 = vadd.f32 %v3169_v53, %v2465_v48  ;;  %v3191_v32 = vadd.f32 %v3190_v43, %v3189_v50  ;;  %v3192_v31 = vpop.f32.mrb[14].mxu1  ;;  %2555 = sbr.rel (%p2957_p12) target bundleno = 1741 (0x6cd), region = 72 }
 0x3ec   : > { %v3193_v55 = vpop.f32.mrb[15].mxu1 }
 0x3ed   : > { %v2545_v36 = vadd.f32 %v3191_v32, %v2505_v52 }
 0x3ef   : > { %v2550_v56 = vadd.f32 %v2545_v36, %v1205_v54 }
 0x3f1   : > { %2551 = vst [vmem:[#allocation3] sm:$0x3] %v2550_v56 }
 0x3f8   : > { %v2556_v46 = vld [vmem:[#allocation3] sm:$0x3] }
 0x3f9   : > { %v2558_v1 = vmin.f32 %v2556_v46, 0.0  ;;  %vm2557_vm4 = vcmp.gt.f32.partialorder %v2556_v46, 0.0 }
 0x3fb   : > { %v2559_v4 = vmul.f32 1.442695, %v2558_v1 }
 0x3fd   : > { %3634 = vpow2.f32 %v2559_v4 }
 0x407   : > { %v3635_v10 = vpop.eup %3634 }
 0x408   : > { %v2958_v17 = vadd.f32 -1.0, %v3635_v10 }
 0x40a   : > { %v2562_v18 = vsel %vm2557_vm4, %v2556_v46, %v2958_v17 }
 0x40b   : > { %3331 = vmatmul.mubr.f32.vlgmr.msra.gmra.mrb[0].mxu0 %v2562_v18 }
 0x4de   : > { %v2652_v20 = vpop.f32.mrb[0].mxu0 }
 0x4df   : > { %v2653_v37 = vadd.f32 %v2959_v33, %v2652_v20  ;;  %v3332_v21 = vpop.f32.mrb[1].mxu0 }
 0x4e1   : > { %v2657_v22 = vsel %vm2656_vm5, %v2653_v37, -inf }
 0x4e2   : > { %2658 = vmax.xlane.f32.xlu0 %v2657_v22 }
 0x56f   : > { %v2659_v23 = vpop.xlane.xlu0 %2658 }
 0x570   : > { %v2660_v28 = vsub.f32 %v2653_v37, %v2659_v23 }
 0x572   : > { %v2661_v29 = vmul.f32 1.442695, %v2660_v28 }
 0x574   : > { %3636 = vpow2.f32 %v2661_v29 }
 0x57e   : > { %v3637_v30 = vpop.eup %3636 }
 0x57f   : > { %v2663_v34 = vsel %vm2656_vm5, %v3637_v30, 0.0 }
 0x580   : > { %2664 = vadd.xlane.f32.xlu0 %v2663_v34 }
 0x60d   : > { %v2665_v35 = vpop.xlane.xlu0 %2664 }
 0x60e   : > { %3638 = vrcp.f32 %v2665_v35 }
 0x618   : > { %v3639_v24 = vpop.eup %3638 }
 0x619   : > { %v2667_v38 = vmul.f32 %v3639_v24, %v2665_v35 }
 0x61b   : > { %v2668_v25 = vsub.f32 2.0, %v2667_v38 }
 0x61d   : > { %v2669_v39 = vmul.f32 %v3639_v24, %v2668_v25 }
 0x61f   : > { %v2670_v40 = vmul.f32 %v3637_v30, %v2669_v39 }
 0x621   : > { %v2671_v41 = vmul.f32 1.442695, %v2670_v40 }
 0x623   : > { %3640 = vpow2.f32 %v2671_v41 }
 0x62d   : > { %v3641_v48 = vpop.eup %3640 }
 0x62e   : > { %v2673_v49 = vsel %vm2656_vm5, %v3641_v48, 0.0 }
 0x62f   : > { %2674 = vadd.xlane.f32.xlu1 %v2673_v49 }
 0x6bc   : > { %v2675_v42 = vpop.xlane.xlu1 %2674 }
 0x6bd   : > { %3642 = vlog2.f32 %v2675_v42 }
 0x6c7   : > { %v3643_v50 = vpop.eup %3642 }
 0x6c8   : > { %v2677_v53 = vmul.f32 0.6931472, %v3643_v50 }
 0x6ca   : > { %v2678_v51 = vsub.f32 %v2670_v40, %v2677_v53 }
 0x6cc   : > { %2679 = vst.msk [vmem:[#allocation12] sm:$0x3] %vm2656_vm5, %v2678_v51 }
 0x6cd PF: > { %p3426_p2 = scmp.eq.s32.totalorder %s3910_s28, 3  ;;  %s3850_s29 = smov [#allocation12]  }
 0x6ce   : > { %s2687_s24 = sshll.u32 %s3850_s29, 4  ;;  %s2688_s24 = int_to_ptr.vmem [resolvable:$true] %s2687_s24 }
 0x6cf   : > { %s3758_s16 = scalar_lea.vmem %s2688_s24, 32  ;;  %p3765_p1 = scmp.lt.s32.totalorder %s2688_s24, %s2688_s24 }
 0x6d0   : > { %p3759_p3 = scmp.ne.s32.totalorder %s2688_s24, %s3758_s16  ;;  %p3766_p5 = scmp.lt.s32.totalorder %s3758_s16, %s3758_s16 }
 0x6d2   : > { %p3760_p8 = pnand %p3759_p3, %p3426_p2  ;;  %p3767_p10 = por %p3766_p5, %p3765_p1 }
 0x6d4   : > { %p3761_p9 = pneg %p3760_p8 }
 0x6d6   : > { %p3768_p0 = pnand %p3767_p10, %p3761_p9 }
 0x6d8   : > { %3771 = shalt.err (!%p3768_p0)
}
 0x6d9   : > { %s4676_s12 = sld [smem:[#allocation21_spill]] }
 0x6df   : > { %s3772_s18 = scalar_lea.hbm %s4676_s12, 32 }
 0x6e0   : > { %p3773_p13 = scmp.ne.s32.totalorder %s4676_s12, %s3772_s18  ;;  %p3778_p7 = scmp.lt.u32.totalorder %s3772_s18, %s4676_s12 }
 0x6e2   : > { %p3774_p4 = pnand %p3773_p13, %p3426_p2 }
 0x6e4   : > { %p3775_p6 = pneg %p3774_p4 }
 0x6e6   : > { %p3780_p11 = pnand %p3778_p7, %p3775_p6 }
 0x6e8   : > { %3783 = shalt.err (!%p3780_p11)
}
 0x6e9   : > { %3402 = dma.vmem_to_hbm [thread:$0]  (%p3426_p2), %s2688_s24, 32, %s4676_s12, [#allocation6]  }
 0x6ea   : > { %3817 = dma.done.wait (%p3426_p2), [#allocation6], 32  }
 0x6eb   : > { %3819 = vsyncadd (%p3426_p2), [#allocation6], 4294967264 }
 0x6ec PF: > { %s4677_s27 = sld [smem:[#allocation18_spill]]  ;;  %s4678_s30 = sld [smem:[#allocation19_spill]] }
 0x6ed   : > { %s4679_s24 = smov %s3826_s25  ;;  %s4680_s25 = smov %s3830_s26 }
 0x6f2   : > { %p20_p12 = scmp.ge.s32.totalorder %s4677_s27, 6   ;;  %s4681_s26 = smov %s4678_s30 }
 0x6f4   :  { %22 = sbr.rel (!%p20_p12) target bundleno = 9 (0x9), region = 114 }
 0x6fb   :  { %2700 = vsyncpa [#allocation5], 1 }
 0x6fc   :  { %2702 = vsyncpa [#allocation5 + $0x1], 1 }
 0x6fd   :  { %2703 = vsyncpa [#allocation8], 1 }
 0x6fe   :  { %2705 = vsyncpa [#allocation8 + $0x1], 1 }
 0x6ff   :  { %2706 = vsyncpa [#allocation11], 1 }
 0x700   :  { %2707 = vsyncpa [#allocation6], 1 }
 0x701   :  { %2709 = vsyncpa [#allocation6 + $0x1], 1 }

</bundles_post_ra>
